<compile_context>
chip_gen: v5e
topology: v5e:2x2
jax: 0.10.0
libtpu: 0.0.40
codegen_flags: <defaults>
</compile_context>

<pallas_src>
import functools

import numpy as np

import jax
import jax.numpy as jnp
from jax.experimental import pallas as pl
from jax.experimental.pallas import tpu as pltpu

KS = 3          # conv kernel size
EPS = 1e-5      # InstanceNorm2d default eps


# ---------------------------------------------------------------------------
# Fused kernel: conv+IN+ReLU -> conv+IN -> +residual, one image per grid step
# ---------------------------------------------------------------------------
def _residual_block_kernel(x_ref, masks_ref, w1_ref, b1_ref, w2_ref, b2_ref,
                           o_ref, *, H, W):
    # x_ref:   (1, C, Lp) f32  reflect-padded image flattened to a "canvas",
    #                          lane-padded: Lp = round_up((H+2)*(W+2), 128)
    # masks:   (5, Lp)    f32  [interior, col==0, col==W+1, row==0, row==H+1]
    # w*_ref:  (9, C, C)  matmul dtype (bf16/f32), one (Cout,Cin) slice per tap
    # b*_ref:  (C, 1)     f32
    # o_ref:   (1, C, Lp) f32  output canvas (valid at interior positions)
    C = x_ref.shape[1]
    Lp = x_ref.shape[2]
    Wp = W + 2
    inv_hw = 1.0 / float(H * W)

    x = x_ref[0]                               # (C, Lp) f32
    msk = masks_ref[...]                       # (5, Lp) f32
    m_int = msk[0:1, :]
    m_u0, m_uW = msk[1:2, :], msk[2:3, :]
    m_v0, m_vH = msk[3:4, :], msk[4:5, :]

    def lshift(a, k):
        # out[:, q] = a[:, (q + k) mod Lp].  Interior conv reads never exceed
        # index (H+2)*(W+2)-1 < Lp, so the cyclic wrap never reaches them.
        s = (-k) % Lp
        if s == 0:
            return a
        return pltpu.roll(a, shift=s, axis=1)   # XLU rotate, no VMEM copy

    def blend(m, a, b):                         # m*a + (1-m)*b with m in {0,1}
        return b + m * (a - b)

    def conv_instnorm(src, w_ref, b_ref):
        # 9 accumulating per-tap MXU matmuls; only one rolled copy live at a time.
        acc = None
        t = 0
        for dy in range(KS):
            for dx in range(KS):
                k = (dy - 1) * Wp + (dx - 1)
                tap = lshift(src, k).astype(w_ref.dtype)        # (C, Lp)
                part = jnp.dot(w_ref[t], tap,                    # (C,C)@(C,Lp)
                               preferred_element_type=jnp.float32)
                acc = part if acc is None else acc + part
                t += 1
        y = acc + b_ref[...]                                     # (C, Lp) f32
        # Two-pass InstanceNorm stats over the H*W valid interior positions.
        mean = jnp.sum(y * m_int, axis=1, keepdims=True) * inv_hw
        d = (y - mean) * m_int
        var = jnp.sum(d * d, axis=1, keepdims=True) * inv_hw
        return (y - mean) * jax.lax.rsqrt(var + EPS)

    # Block 1: conv -> InstanceNorm -> ReLU (valid at interior canvas positions).
    h = jnp.maximum(conv_instnorm(x, w1_ref, b1_ref), 0.0)

    # Rebuild reflect padding of h on the border ring, in-register
    # (XLU rolls + VPU blends; corners handled by col-then-row order).
    hc = blend(m_u0, lshift(h, 2), h)            # col 0     <- col 2
    hc = blend(m_uW, lshift(h, -2), hc)          # col Wp-1  <- col Wp-3
    hc = blend(m_v0, lshift(hc, 2 * Wp), hc)     # row 0     <- row 2
    hc = blend(m_vH, lshift(hc, -2 * Wp), hc)    # row Hp-1  <- row Hp-3

    # Block 2: conv -> InstanceNorm (no activation), then residual add.
    y2 = conv_instnorm(hc, w2_ref, b2_ref)
    o_ref[0] = (y2 + x).astype(o_ref.dtype)


# ---------------------------------------------------------------------------
# Wrapper (layout-only glue in plain JAX: reflect pad, lane-pad, weight split)
# ---------------------------------------------------------------------------
def _vmem_capacity_bytes(default=64 * 2 ** 20):
    try:
        info = pltpu.get_tpu_info()
        cap = int(getattr(info, "vmem_capacity_bytes", 0) or 0)
        if cap > 0:
            return cap
    except Exception:
        pass
    return default


def residual_block(x, w1, b1, w2, b2, *, matmul_dtype=jnp.bfloat16):
    """x + ConvBlock(no-act)(ConvBlock(relu)(x)) — PyTorch ResidualBlock fwd."""
    N, C, H, W = x.shape
    Hp, Wp = H + 2, W + 2
    L = Hp * Wp
    Lp = ((L + 127) // 128) * 128            # lane-dense stores

    # Reflect-pad, flatten to the canvas, zero-pad lanes: (N, C, Lp).
    xc = jnp.pad(x, ((0, 0), (0, 0), (1, 1), (1, 1)), mode="reflect")
    xc = xc.reshape(N, C, L).astype(jnp.float32)
    xc = jnp.pad(xc, ((0, 0), (0, 0), (0, Lp - L)))

    # (Cout, Cin, 3, 3) -> (9, Cout, Cin); tap index t = ky*3 + kx matches the
    # in-kernel loop order.
    def split_w(w):
        return jnp.transpose(w, (2, 3, 0, 1)).reshape(KS * KS, C, C).astype(matmul_dtype)

    w1f, w2f = split_w(w1), split_w(w2)
    b1c = b1.reshape(C, 1).astype(jnp.float32)
    b2c = b2.reshape(C, 1).astype(jnp.float32)

    # Host-side constant masks over the lane-padded canvas (zero in pad region).
    q = np.arange(Lp)
    u, v = q % Wp, q // Wp
    valid = q < L
    masks = jnp.asarray(np.stack([
        ((u >= 1) & (u <= W) & (v >= 1) & (v <= H) & valid),
        (u == 0) & valid,
        (u == Wp - 1) & valid,
        (v == 0) & valid,
        (v == Hp - 1) & valid,
    ], axis=0).astype(np.float32))

    kernel = functools.partial(_residual_block_kernel, H=H, W=W)

    # Generation-aware VMEM budget (in-kernel live set + 2x-buffered IO + weights).
    itemsize = jnp.dtype(matmul_dtype).itemsize
    f32b = 4
    live = 8 * C * Lp * f32b                       # x, h, hc, acc, tap, y + slack
    io = 2 * 2 * C * Lp * f32b                     # double-buffered in/out canvas
    wts = 2 * 2 * KS * KS * C * C * itemsize       # double-buffered weights
    misc = 2 * (5 * Lp + 2 * C) * f32b             # masks + biases
    need = live + io + wts + misc
    cap = _vmem_capacity_bytes()
    vmem_limit = int(min(max(2 * need, 16 * 2 ** 20), int(0.85 * cap)))

    ce = pl.CostEstimate(
        flops=int(2 * 2 * KS * KS * C * C * H * W * N),      # two 3x3 convs
        transcendentals=int(2 * C * N),                      # rsqrt per channel
        bytes_accessed=int(2 * N * C * Lp * f32b
                           + 2 * KS * KS * C * C * itemsize
                           + 5 * Lp * f32b + 2 * C * f32b),
    )

    out = pl.pallas_call(
        kernel,
        out_shape=jax.ShapeDtypeStruct((N, C, Lp), jnp.float32),
        grid_spec=pltpu.PrefetchScalarGridSpec(
            num_scalar_prefetch=0,
            grid=(N,),
            in_specs=[
                pl.BlockSpec((1, C, Lp), lambda n: (n, 0, 0)),       # x canvas
                pl.BlockSpec((5, Lp), lambda n: (0, 0)),             # masks
                pl.BlockSpec((KS * KS, C, C), lambda n: (0, 0, 0)),  # w1 taps
                pl.BlockSpec((C, 1), lambda n: (0, 0)),              # b1
                pl.BlockSpec((KS * KS, C, C), lambda n: (0, 0, 0)),  # w2 taps
                pl.BlockSpec((C, 1), lambda n: (0, 0)),              # b2
            ],
            out_specs=pl.BlockSpec((1, C, Lp), lambda n: (n, 0, 0)),
        ),
        compiler_params=pltpu.CompilerParams(
            dimension_semantics=("parallel",),
            vmem_limit_bytes=vmem_limit,
        ),
        cost_estimate=ce,
    )(xc, masks, w1f, b1c, w2f, b2c)

    # Keep only the valid interior canvas positions -> (N, C, H, W).
    return out[:, :, :L].reshape(N, C, Hp, Wp)[:, :, 1:H + 1, 1:W + 1]


# ---------------------------------------------------------------------------
# Pure-JAX reference (correctness check only)
# ---------------------------------------------------------------------------
def _conv_block_ref(x, w, b, relu):
    xp = jnp.pad(x, ((0, 0), (0, 0), (1, 1), (1, 1)), mode="reflect")
    y = jax.lax.conv_general_dilated(
        xp, w, window_strides=(1, 1), padding="VALID",
        dimension_numbers=("NCHW", "OIHW", "NCHW"))
    y = y + b.reshape(1, -1, 1, 1)
    mean = y.mean(axis=(2, 3), keepdims=True)
    var = ((y - mean) ** 2).mean(axis=(2, 3), keepdims=True)
    y = (y - mean) * jax.lax.rsqrt(var + EPS)
    return jnp.maximum(y, 0.0) if relu else y


def _residual_block_ref(x, w1, b1, w2, b2):
    h = _conv_block_ref(x, w1, b1, relu=True)
    return x + _conv_block_ref(h, w2, b2, relu=False)


# ---------------------------------------------------------------------------
if __name__ == "__main__":
    N, C, H, W = 2, 4, 16, 16
    key = jax.random.PRNGKey(0)
    kx, kw1, kb1, kw2, kb2 = jax.random.split(key, 5)

    x = jax.random.normal(kx, (N, C, H, W), dtype=jnp.float32)

    # Deterministic Conv2d-style init: U(-1/sqrt(fan_in), 1/sqrt(fan_in))
    fan_in = C * KS * KS
    bound = 1.0 / (fan_in ** 0.5)
    w1 = jax.random.uniform(kw1, (C, C, KS, KS), jnp.float32, -bound, bound)
    b1 = jax.random.uniform(kb1, (C,), jnp.float32, -bound, bound)
    w2 = jax.random.uniform(kw2, (C, C, KS, KS), jnp.float32, -bound, bound)
    b2 = jax.random.uniform(kb2, (C,), jnp.float32, -bound, bound)

    ref = _residual_block_ref(x, w1, b1, w2, b2)

    # f32 matmul path: tight comparison against the f32 reference.
    out = jax.block_until_ready(
        residual_block(x, w1, b1, w2, b2, matmul_dtype=jnp.float32))
    assert out.shape == (N, C, H, W)
    err_f32 = float(jnp.max(jnp.abs(out - ref)))
    assert err_f32 < 1e-3, f"f32 path mismatch vs reference: {err_f32}"

    # bf16 matmul path (f32 accumulation, f32 norm/residual): looser tolerance.
    out_bf16 = jax.block_until_ready(
        residual_block(x, w1, b1, w2, b2, matmul_dtype=jnp.bfloat16))
    err_bf16 = float(jnp.max(jnp.abs(out_bf16 - ref)))
    assert err_bf16 < 5e-2, f"bf16 path mismatch vs reference: {err_bf16}"

    print("KERNEL_OK")
</pallas_src>

<mosaic_0001>
module attributes {stable_mosaic.version = 11 : i64} {
  func.func @_residual_block_kernel(%arg0: i32, %arg1: memref<1x4x384xf32, #tpu.memory_space<vmem>>, %arg2: memref<5x384xf32, #tpu.memory_space<vmem>>, %arg3: memref<9x4x4xf32, #tpu.memory_space<vmem>>, %arg4: memref<4x1xf32, #tpu.memory_space<vmem>>, %arg5: memref<9x4x4xf32, #tpu.memory_space<vmem>>, %arg6: memref<4x1xf32, #tpu.memory_space<vmem>>, %arg7: memref<1x4x384xf32, #tpu.memory_space<vmem>>) attributes {dimension_semantics = [#tpu.dimension_semantics<parallel>], iteration_bounds = array<i64: 2>, scalar_prefetch = 0 : i64, scratch_operands = 0 : i64, tpu.core_type = #tpu.core_type<tc>, window_params = [{transform_indices = @transform_0, window_bounds = array<i64: 1, 4, 384>}, {pipeline_mode = #tpu.pipeline_mode<synchronous>, transform_indices = @transform_1, window_bounds = array<i64: 5, 384>}, {pipeline_mode = #tpu.pipeline_mode<synchronous>, transform_indices = @transform_2, window_bounds = array<i64: 9, 4, 4>}, {pipeline_mode = #tpu.pipeline_mode<synchronous>, transform_indices = @transform_3, window_bounds = array<i64: 4, 1>}, {pipeline_mode = #tpu.pipeline_mode<synchronous>, transform_indices = @transform_4, window_bounds = array<i64: 9, 4, 4>}, {pipeline_mode = #tpu.pipeline_mode<synchronous>, transform_indices = @transform_5, window_bounds = array<i64: 4, 1>}, {transform_indices = @transform_6, window_bounds = array<i64: 1, 4, 384>}]} {
    %c0 = arith.constant 0 : index
    %c0_0 = arith.constant 0 : index
    %c0_1 = arith.constant 0 : index
    %0 = vector.load %arg1[%c0, %c0_0, %c0_1] : memref<1x4x384xf32, #tpu.memory_space<vmem>>, vector<1x4x384xf32>
    %1 = vector.shape_cast %0 : vector<1x4x384xf32> to vector<4x384xf32>
    %c0_2 = arith.constant 0 : index
    %c0_3 = arith.constant 0 : index
    %2 = vector.load %arg2[%c0_2, %c0_3] : memref<5x384xf32, #tpu.memory_space<vmem>>, vector<5x384xf32>
    %3 = vector.extract_strided_slice %2 {offsets = [0, 0], sizes = [1, 384], strides = [1, 1]} : vector<5x384xf32> to vector<1x384xf32>
    %4 = vector.extract_strided_slice %2 {offsets = [1, 0], sizes = [1, 384], strides = [1, 1]} : vector<5x384xf32> to vector<1x384xf32>
    %5 = vector.extract_strided_slice %2 {offsets = [2, 0], sizes = [1, 384], strides = [1, 1]} : vector<5x384xf32> to vector<1x384xf32>
    %6 = vector.extract_strided_slice %2 {offsets = [3, 0], sizes = [1, 384], strides = [1, 1]} : vector<5x384xf32> to vector<1x384xf32>
    %7 = vector.extract_strided_slice %2 {offsets = [4, 0], sizes = [1, 384], strides = [1, 1]} : vector<5x384xf32> to vector<1x384xf32>
    %c19_i32 = arith.constant 19 : i32
    %8 = tpu.dynamic_rotate %1 by %c19_i32 dim 1 : vector<4x384xf32>, i32 -> vector<4x384xf32>
    %c0_4 = arith.constant 0 : index
    %c0_5 = arith.constant 0 : index
    %c0_6 = arith.constant 0 : index
    %9 = vector.load %arg3[%c0_4, %c0_5, %c0_6] : memref<9x4x4xf32, #tpu.memory_space<vmem>>, vector<1x4x4xf32>
    %10 = vector.shape_cast %9 : vector<1x4x4xf32> to vector<4x4xf32>
    %cst = arith.constant dense<0.000000e+00> : vector<4x384xf32>
    %11 = tpu.matmul %10, %8, %cst {dimension_numbers = #tpu.dot_dimension_numbers<[1], [0], [0], [1], [0, 0, 1, 1], [], []>} : vector<4x4xf32>, vector<4x384xf32>, vector<4x384xf32> -> vector<4x384xf32>
    %c18_i32 = arith.constant 18 : i32
    %12 = tpu.dynamic_rotate %1 by %c18_i32 dim 1 : vector<4x384xf32>, i32 -> vector<4x384xf32>
    %c1 = arith.constant 1 : index
    %c0_7 = arith.constant 0 : index
    %c0_8 = arith.constant 0 : index
    %13 = vector.load %arg3[%c1, %c0_7, %c0_8] : memref<9x4x4xf32, #tpu.memory_space<vmem>>, vector<1x4x4xf32>
    %14 = vector.shape_cast %13 : vector<1x4x4xf32> to vector<4x4xf32>
    %cst_9 = arith.constant dense<0.000000e+00> : vector<4x384xf32>
    %15 = tpu.matmul %14, %12, %cst_9 {dimension_numbers = #tpu.dot_dimension_numbers<[1], [0], [0], [1], [0, 0, 1, 1], [], []>} : vector<4x4xf32>, vector<4x384xf32>, vector<4x384xf32> -> vector<4x384xf32>
    %16 = arith.addf %11, %15 : vector<4x384xf32>
    %c17_i32 = arith.constant 17 : i32
    %17 = tpu.dynamic_rotate %1 by %c17_i32 dim 1 : vector<4x384xf32>, i32 -> vector<4x384xf32>
    %c2 = arith.constant 2 : index
    %c0_10 = arith.constant 0 : index
    %c0_11 = arith.constant 0 : index
    %18 = vector.load %arg3[%c2, %c0_10, %c0_11] : memref<9x4x4xf32, #tpu.memory_space<vmem>>, vector<1x4x4xf32>
    %19 = vector.shape_cast %18 : vector<1x4x4xf32> to vector<4x4xf32>
    %cst_12 = arith.constant dense<0.000000e+00> : vector<4x384xf32>
    %20 = tpu.matmul %19, %17, %cst_12 {dimension_numbers = #tpu.dot_dimension_numbers<[1], [0], [0], [1], [0, 0, 1, 1], [], []>} : vector<4x4xf32>, vector<4x384xf32>, vector<4x384xf32> -> vector<4x384xf32>
    %21 = arith.addf %16, %20 : vector<4x384xf32>
    %c1_i32 = arith.constant 1 : i32
    %22 = tpu.dynamic_rotate %1 by %c1_i32 dim 1 : vector<4x384xf32>, i32 -> vector<4x384xf32>
    %c3 = arith.constant 3 : index
    %c0_13 = arith.constant 0 : index
    %c0_14 = arith.constant 0 : index
    %23 = vector.load %arg3[%c3, %c0_13, %c0_14] : memref<9x4x4xf32, #tpu.memory_space<vmem>>, vector<1x4x4xf32>
    %24 = vector.shape_cast %23 : vector<1x4x4xf32> to vector<4x4xf32>
    %cst_15 = arith.constant dense<0.000000e+00> : vector<4x384xf32>
    %25 = tpu.matmul %24, %22, %cst_15 {dimension_numbers = #tpu.dot_dimension_numbers<[1], [0], [0], [1], [0, 0, 1, 1], [], []>} : vector<4x4xf32>, vector<4x384xf32>, vector<4x384xf32> -> vector<4x384xf32>
    %26 = arith.addf %21, %25 : vector<4x384xf32>
    %c4 = arith.constant 4 : index
    %c0_16 = arith.constant 0 : index
    %c0_17 = arith.constant 0 : index
    %27 = vector.load %arg3[%c4, %c0_16, %c0_17] : memref<9x4x4xf32, #tpu.memory_space<vmem>>, vector<1x4x4xf32>
    %28 = vector.shape_cast %27 : vector<1x4x4xf32> to vector<4x4xf32>
    %cst_18 = arith.constant dense<0.000000e+00> : vector<4x384xf32>
    %29 = tpu.matmul %28, %1, %cst_18 {dimension_numbers = #tpu.dot_dimension_numbers<[1], [0], [0], [1], [0, 0, 1, 1], [], []>} : vector<4x4xf32>, vector<4x384xf32>, vector<4x384xf32> -> vector<4x384xf32>
    %30 = arith.addf %26, %29 : vector<4x384xf32>
    %c383_i32 = arith.constant 383 : i32
    %31 = tpu.dynamic_rotate %1 by %c383_i32 dim 1 : vector<4x384xf32>, i32 -> vector<4x384xf32>
    %c5 = arith.constant 5 : index
    %c0_19 = arith.constant 0 : index
    %c0_20 = arith.constant 0 : index
    %32 = vector.load %arg3[%c5, %c0_19, %c0_20] : memref<9x4x4xf32, #tpu.memory_space<vmem>>, vector<1x4x4xf32>
    %33 = vector.shape_cast %32 : vector<1x4x4xf32> to vector<4x4xf32>
    %cst_21 = arith.constant dense<0.000000e+00> : vector<4x384xf32>
    %34 = tpu.matmul %33, %31, %cst_21 {dimension_numbers = #tpu.dot_dimension_numbers<[1], [0], [0], [1], [0, 0, 1, 1], [], []>} : vector<4x4xf32>, vector<4x384xf32>, vector<4x384xf32> -> vector<4x384xf32>
    %35 = arith.addf %30, %34 : vector<4x384xf32>
    %c367_i32 = arith.constant 367 : i32
    %36 = tpu.dynamic_rotate %1 by %c367_i32 dim 1 : vector<4x384xf32>, i32 -> vector<4x384xf32>
    %c6 = arith.constant 6 : index
    %c0_22 = arith.constant 0 : index
    %c0_23 = arith.constant 0 : index
    %37 = vector.load %arg3[%c6, %c0_22, %c0_23] : memref<9x4x4xf32, #tpu.memory_space<vmem>>, vector<1x4x4xf32>
    %38 = vector.shape_cast %37 : vector<1x4x4xf32> to vector<4x4xf32>
    %cst_24 = arith.constant dense<0.000000e+00> : vector<4x384xf32>
    %39 = tpu.matmul %38, %36, %cst_24 {dimension_numbers = #tpu.dot_dimension_numbers<[1], [0], [0], [1], [0, 0, 1, 1], [], []>} : vector<4x4xf32>, vector<4x384xf32>, vector<4x384xf32> -> vector<4x384xf32>
    %40 = arith.addf %35, %39 : vector<4x384xf32>
    %c366_i32 = arith.constant 366 : i32
    %41 = tpu.dynamic_rotate %1 by %c366_i32 dim 1 : vector<4x384xf32>, i32 -> vector<4x384xf32>
    %c7 = arith.constant 7 : index
    %c0_25 = arith.constant 0 : index
    %c0_26 = arith.constant 0 : index
    %42 = vector.load %arg3[%c7, %c0_25, %c0_26] : memref<9x4x4xf32, #tpu.memory_space<vmem>>, vector<1x4x4xf32>
    %43 = vector.shape_cast %42 : vector<1x4x4xf32> to vector<4x4xf32>
    %cst_27 = arith.constant dense<0.000000e+00> : vector<4x384xf32>
    %44 = tpu.matmul %43, %41, %cst_27 {dimension_numbers = #tpu.dot_dimension_numbers<[1], [0], [0], [1], [0, 0, 1, 1], [], []>} : vector<4x4xf32>, vector<4x384xf32>, vector<4x384xf32> -> vector<4x384xf32>
    %45 = arith.addf %40, %44 : vector<4x384xf32>
    %c365_i32 = arith.constant 365 : i32
    %46 = tpu.dynamic_rotate %1 by %c365_i32 dim 1 : vector<4x384xf32>, i32 -> vector<4x384xf32>
    %c8 = arith.constant 8 : index
    %c0_28 = arith.constant 0 : index
    %c0_29 = arith.constant 0 : index
    %47 = vector.load %arg3[%c8, %c0_28, %c0_29] : memref<9x4x4xf32, #tpu.memory_space<vmem>>, vector<1x4x4xf32>
    %48 = vector.shape_cast %47 : vector<1x4x4xf32> to vector<4x4xf32>
    %cst_30 = arith.constant dense<0.000000e+00> : vector<4x384xf32>
    %49 = tpu.matmul %48, %46, %cst_30 {dimension_numbers = #tpu.dot_dimension_numbers<[1], [0], [0], [1], [0, 0, 1, 1], [], []>} : vector<4x4xf32>, vector<4x384xf32>, vector<4x384xf32> -> vector<4x384xf32>
    %50 = arith.addf %45, %49 : vector<4x384xf32>
    %c0_31 = arith.constant 0 : index
    %c0_32 = arith.constant 0 : index
    %51 = vector.load %arg4[%c0_31, %c0_32] : memref<4x1xf32, #tpu.memory_space<vmem>>, vector<4x1xf32>
    %52 = vector.broadcast %51 : vector<4x1xf32> to vector<4x384xf32>
    %53 = arith.addf %50, %52 : vector<4x384xf32>
    %54 = vector.broadcast %3 : vector<1x384xf32> to vector<4x384xf32>
    %55 = arith.mulf %53, %54 : vector<4x384xf32>
    %cst_33 = arith.constant dense<0.000000e+00> : vector<4xf32>
    %56 = vector.multi_reduction <add>, %55, %cst_33 [1] : vector<4x384xf32> to vector<4xf32>
    %57 = vector.shape_cast %56 : vector<4xf32> to vector<4x1xf32>
    %cst_34 = arith.constant 3.906250e-03 : f32
    %58 = vector.broadcast %cst_34 : f32 to vector<4x1xf32>
    %59 = arith.mulf %57, %58 : vector<4x1xf32>
    %60 = vector.broadcast %59 : vector<4x1xf32> to vector<4x384xf32>
    %61 = arith.subf %53, %60 : vector<4x384xf32>
    %62 = vector.broadcast %3 : vector<1x384xf32> to vector<4x384xf32>
    %63 = arith.mulf %61, %62 : vector<4x384xf32>
    %64 = arith.mulf %63, %63 : vector<4x384xf32>
    %cst_35 = arith.constant dense<0.000000e+00> : vector<4xf32>
    %65 = vector.multi_reduction <add>, %64, %cst_35 [1] : vector<4x384xf32> to vector<4xf32>
    %66 = vector.shape_cast %65 : vector<4xf32> to vector<4x1xf32>
    %cst_36 = arith.constant 3.906250e-03 : f32
    %67 = vector.broadcast %cst_36 : f32 to vector<4x1xf32>
    %68 = arith.mulf %66, %67 : vector<4x1xf32>
    %69 = vector.broadcast %59 : vector<4x1xf32> to vector<4x384xf32>
    %70 = arith.subf %53, %69 : vector<4x384xf32>
    %cst_37 = arith.constant 9.99999974E-6 : f32
    %71 = vector.broadcast %cst_37 : f32 to vector<4x1xf32>
    %72 = arith.addf %68, %71 : vector<4x1xf32>
    %73 = math.rsqrt %72 : vector<4x1xf32>
    %74 = vector.broadcast %73 : vector<4x1xf32> to vector<4x384xf32>
    %75 = arith.mulf %70, %74 : vector<4x384xf32>
    %cst_38 = arith.constant 0.000000e+00 : f32
    %76 = vector.broadcast %cst_38 : f32 to vector<4x384xf32>
    %77 = arith.maximumf %75, %76 : vector<4x384xf32>
    %c382_i32 = arith.constant 382 : i32
    %78 = tpu.dynamic_rotate %77 by %c382_i32 dim 1 : vector<4x384xf32>, i32 -> vector<4x384xf32>
    %79 = arith.subf %78, %77 : vector<4x384xf32>
    %80 = vector.broadcast %4 : vector<1x384xf32> to vector<4x384xf32>
    %81 = arith.mulf %80, %79 : vector<4x384xf32>
    %82 = arith.addf %77, %81 : vector<4x384xf32>
    %c2_i32 = arith.constant 2 : i32
    %83 = tpu.dynamic_rotate %77 by %c2_i32 dim 1 : vector<4x384xf32>, i32 -> vector<4x384xf32>
    %84 = arith.subf %83, %82 : vector<4x384xf32>
    %85 = vector.broadcast %5 : vector<1x384xf32> to vector<4x384xf32>
    %86 = arith.mulf %85, %84 : vector<4x384xf32>
    %87 = arith.addf %82, %86 : vector<4x384xf32>
    %c348_i32 = arith.constant 348 : i32
    %88 = tpu.dynamic_rotate %87 by %c348_i32 dim 1 : vector<4x384xf32>, i32 -> vector<4x384xf32>
    %89 = arith.subf %88, %87 : vector<4x384xf32>
    %90 = vector.broadcast %6 : vector<1x384xf32> to vector<4x384xf32>
    %91 = arith.mulf %90, %89 : vector<4x384xf32>
    %92 = arith.addf %87, %91 : vector<4x384xf32>
    %c36_i32 = arith.constant 36 : i32
    %93 = tpu.dynamic_rotate %92 by %c36_i32 dim 1 : vector<4x384xf32>, i32 -> vector<4x384xf32>
    %94 = arith.subf %93, %92 : vector<4x384xf32>
    %95 = vector.broadcast %7 : vector<1x384xf32> to vector<4x384xf32>
    %96 = arith.mulf %95, %94 : vector<4x384xf32>
    %97 = arith.addf %92, %96 : vector<4x384xf32>
    %c19_i32_39 = arith.constant 19 : i32
    %98 = tpu.dynamic_rotate %97 by %c19_i32_39 dim 1 : vector<4x384xf32>, i32 -> vector<4x384xf32>
    %c0_40 = arith.constant 0 : index
    %c0_41 = arith.constant 0 : index
    %c0_42 = arith.constant 0 : index
    %99 = vector.load %arg5[%c0_40, %c0_41, %c0_42] : memref<9x4x4xf32, #tpu.memory_space<vmem>>, vector<1x4x4xf32>
    %100 = vector.shape_cast %99 : vector<1x4x4xf32> to vector<4x4xf32>
    %cst_43 = arith.constant dense<0.000000e+00> : vector<4x384xf32>
    %101 = tpu.matmul %100, %98, %cst_43 {dimension_numbers = #tpu.dot_dimension_numbers<[1], [0], [0], [1], [0, 0, 1, 1], [], []>} : vector<4x4xf32>, vector<4x384xf32>, vector<4x384xf32> -> vector<4x384xf32>
    %c18_i32_44 = arith.constant 18 : i32
    %102 = tpu.dynamic_rotate %97 by %c18_i32_44 dim 1 : vector<4x384xf32>, i32 -> vector<4x384xf32>
    %c1_45 = arith.constant 1 : index
    %c0_46 = arith.constant 0 : index
    %c0_47 = arith.constant 0 : index
    %103 = vector.load %arg5[%c1_45, %c0_46, %c0_47] : memref<9x4x4xf32, #tpu.memory_space<vmem>>, vector<1x4x4xf32>
    %104 = vector.shape_cast %103 : vector<1x4x4xf32> to vector<4x4xf32>
    %cst_48 = arith.constant dense<0.000000e+00> : vector<4x384xf32>
    %105 = tpu.matmul %104, %102, %cst_48 {dimension_numbers = #tpu.dot_dimension_numbers<[1], [0], [0], [1], [0, 0, 1, 1], [], []>} : vector<4x4xf32>, vector<4x384xf32>, vector<4x384xf32> -> vector<4x384xf32>
    %106 = arith.addf %101, %105 : vector<4x384xf32>
    %c17_i32_49 = arith.constant 17 : i32
    %107 = tpu.dynamic_rotate %97 by %c17_i32_49 dim 1 : vector<4x384xf32>, i32 -> vector<4x384xf32>
    %c2_50 = arith.constant 2 : index
    %c0_51 = arith.constant 0 : index
    %c0_52 = arith.constant 0 : index
    %108 = vector.load %arg5[%c2_50, %c0_51, %c0_52] : memref<9x4x4xf32, #tpu.memory_space<vmem>>, vector<1x4x4xf32>
    %109 = vector.shape_cast %108 : vector<1x4x4xf32> to vector<4x4xf32>
    %cst_53 = arith.constant dense<0.000000e+00> : vector<4x384xf32>
    %110 = tpu.matmul %109, %107, %cst_53 {dimension_numbers = #tpu.dot_dimension_numbers<[1], [0], [0], [1], [0, 0, 1, 1], [], []>} : vector<4x4xf32>, vector<4x384xf32>, vector<4x384xf32> -> vector<4x384xf32>
    %111 = arith.addf %106, %110 : vector<4x384xf32>
    %c1_i32_54 = arith.constant 1 : i32
    %112 = tpu.dynamic_rotate %97 by %c1_i32_54 dim 1 : vector<4x384xf32>, i32 -> vector<4x384xf32>
    %c3_55 = arith.constant 3 : index
    %c0_56 = arith.constant 0 : index
    %c0_57 = arith.constant 0 : index
    %113 = vector.load %arg5[%c3_55, %c0_56, %c0_57] : memref<9x4x4xf32, #tpu.memory_space<vmem>>, vector<1x4x4xf32>
    %114 = vector.shape_cast %113 : vector<1x4x4xf32> to vector<4x4xf32>
    %cst_58 = arith.constant dense<0.000000e+00> : vector<4x384xf32>
    %115 = tpu.matmul %114, %112, %cst_58 {dimension_numbers = #tpu.dot_dimension_numbers<[1], [0], [0], [1], [0, 0, 1, 1], [], []>} : vector<4x4xf32>, vector<4x384xf32>, vector<4x384xf32> -> vector<4x384xf32>
    %116 = arith.addf %111, %115 : vector<4x384xf32>
    %c4_59 = arith.constant 4 : index
    %c0_60 = arith.constant 0 : index
    %c0_61 = arith.constant 0 : index
    %117 = vector.load %arg5[%c4_59, %c0_60, %c0_61] : memref<9x4x4xf32, #tpu.memory_space<vmem>>, vector<1x4x4xf32>
    %118 = vector.shape_cast %117 : vector<1x4x4xf32> to vector<4x4xf32>
    %cst_62 = arith.constant dense<0.000000e+00> : vector<4x384xf32>
    %119 = tpu.matmul %118, %97, %cst_62 {dimension_numbers = #tpu.dot_dimension_numbers<[1], [0], [0], [1], [0, 0, 1, 1], [], []>} : vector<4x4xf32>, vector<4x384xf32>, vector<4x384xf32> -> vector<4x384xf32>
    %120 = arith.addf %116, %119 : vector<4x384xf32>
    %c383_i32_63 = arith.constant 383 : i32
    %121 = tpu.dynamic_rotate %97 by %c383_i32_63 dim 1 : vector<4x384xf32>, i32 -> vector<4x384xf32>
    %c5_64 = arith.constant 5 : index
    %c0_65 = arith.constant 0 : index
    %c0_66 = arith.constant 0 : index
    %122 = vector.load %arg5[%c5_64, %c0_65, %c0_66] : memref<9x4x4xf32, #tpu.memory_space<vmem>>, vector<1x4x4xf32>
    %123 = vector.shape_cast %122 : vector<1x4x4xf32> to vector<4x4xf32>
    %cst_67 = arith.constant dense<0.000000e+00> : vector<4x384xf32>
    %124 = tpu.matmul %123, %121, %cst_67 {dimension_numbers = #tpu.dot_dimension_numbers<[1], [0], [0], [1], [0, 0, 1, 1], [], []>} : vector<4x4xf32>, vector<4x384xf32>, vector<4x384xf32> -> vector<4x384xf32>
    %125 = arith.addf %120, %124 : vector<4x384xf32>
    %c367_i32_68 = arith.constant 367 : i32
    %126 = tpu.dynamic_rotate %97 by %c367_i32_68 dim 1 : vector<4x384xf32>, i32 -> vector<4x384xf32>
    %c6_69 = arith.constant 6 : index
    %c0_70 = arith.constant 0 : index
    %c0_71 = arith.constant 0 : index
    %127 = vector.load %arg5[%c6_69, %c0_70, %c0_71] : memref<9x4x4xf32, #tpu.memory_space<vmem>>, vector<1x4x4xf32>
    %128 = vector.shape_cast %127 : vector<1x4x4xf32> to vector<4x4xf32>
    %cst_72 = arith.constant dense<0.000000e+00> : vector<4x384xf32>
    %129 = tpu.matmul %128, %126, %cst_72 {dimension_numbers = #tpu.dot_dimension_numbers<[1], [0], [0], [1], [0, 0, 1, 1], [], []>} : vector<4x4xf32>, vector<4x384xf32>, vector<4x384xf32> -> vector<4x384xf32>
    %130 = arith.addf %125, %129 : vector<4x384xf32>
    %c366_i32_73 = arith.constant 366 : i32
    %131 = tpu.dynamic_rotate %97 by %c366_i32_73 dim 1 : vector<4x384xf32>, i32 -> vector<4x384xf32>
    %c7_74 = arith.constant 7 : index
    %c0_75 = arith.constant 0 : index
    %c0_76 = arith.constant 0 : index
    %132 = vector.load %arg5[%c7_74, %c0_75, %c0_76] : memref<9x4x4xf32, #tpu.memory_space<vmem>>, vector<1x4x4xf32>
    %133 = vector.shape_cast %132 : vector<1x4x4xf32> to vector<4x4xf32>
    %cst_77 = arith.constant dense<0.000000e+00> : vector<4x384xf32>
    %134 = tpu.matmul %133, %131, %cst_77 {dimension_numbers = #tpu.dot_dimension_numbers<[1], [0], [0], [1], [0, 0, 1, 1], [], []>} : vector<4x4xf32>, vector<4x384xf32>, vector<4x384xf32> -> vector<4x384xf32>
    %135 = arith.addf %130, %134 : vector<4x384xf32>
    %c365_i32_78 = arith.constant 365 : i32
    %136 = tpu.dynamic_rotate %97 by %c365_i32_78 dim 1 : vector<4x384xf32>, i32 -> vector<4x384xf32>
    %c8_79 = arith.constant 8 : index
    %c0_80 = arith.constant 0 : index
    %c0_81 = arith.constant 0 : index
    %137 = vector.load %arg5[%c8_79, %c0_80, %c0_81] : memref<9x4x4xf32, #tpu.memory_space<vmem>>, vector<1x4x4xf32>
    %138 = vector.shape_cast %137 : vector<1x4x4xf32> to vector<4x4xf32>
    %cst_82 = arith.constant dense<0.000000e+00> : vector<4x384xf32>
    %139 = tpu.matmul %138, %136, %cst_82 {dimension_numbers = #tpu.dot_dimension_numbers<[1], [0], [0], [1], [0, 0, 1, 1], [], []>} : vector<4x4xf32>, vector<4x384xf32>, vector<4x384xf32> -> vector<4x384xf32>
    %140 = arith.addf %135, %139 : vector<4x384xf32>
    %c0_83 = arith.constant 0 : index
    %c0_84 = arith.constant 0 : index
    %141 = vector.load %arg6[%c0_83, %c0_84] : memref<4x1xf32, #tpu.memory_space<vmem>>, vector<4x1xf32>
    %142 = vector.broadcast %141 : vector<4x1xf32> to vector<4x384xf32>
    %143 = arith.addf %140, %142 : vector<4x384xf32>
    %144 = vector.broadcast %3 : vector<1x384xf32> to vector<4x384xf32>
    %145 = arith.mulf %143, %144 : vector<4x384xf32>
    %cst_85 = arith.constant dense<0.000000e+00> : vector<4xf32>
    %146 = vector.multi_reduction <add>, %145, %cst_85 [1] : vector<4x384xf32> to vector<4xf32>
    %147 = vector.shape_cast %146 : vector<4xf32> to vector<4x1xf32>
    %cst_86 = arith.constant 3.906250e-03 : f32
    %148 = vector.broadcast %cst_86 : f32 to vector<4x1xf32>
    %149 = arith.mulf %147, %148 : vector<4x1xf32>
    %150 = vector.broadcast %149 : vector<4x1xf32> to vector<4x384xf32>
    %151 = arith.subf %143, %150 : vector<4x384xf32>
    %152 = vector.broadcast %3 : vector<1x384xf32> to vector<4x384xf32>
    %153 = arith.mulf %151, %152 : vector<4x384xf32>
    %154 = arith.mulf %153, %153 : vector<4x384xf32>
    %cst_87 = arith.constant dense<0.000000e+00> : vector<4xf32>
    %155 = vector.multi_reduction <add>, %154, %cst_87 [1] : vector<4x384xf32> to vector<4xf32>
    %156 = vector.shape_cast %155 : vector<4xf32> to vector<4x1xf32>
    %cst_88 = arith.constant 3.906250e-03 : f32
    %157 = vector.broadcast %cst_88 : f32 to vector<4x1xf32>
    %158 = arith.mulf %156, %157 : vector<4x1xf32>
    %159 = vector.broadcast %149 : vector<4x1xf32> to vector<4x384xf32>
    %160 = arith.subf %143, %159 : vector<4x384xf32>
    %cst_89 = arith.constant 9.99999974E-6 : f32
    %161 = vector.broadcast %cst_89 : f32 to vector<4x1xf32>
    %162 = arith.addf %158, %161 : vector<4x1xf32>
    %163 = math.rsqrt %162 : vector<4x1xf32>
    %164 = vector.broadcast %163 : vector<4x1xf32> to vector<4x384xf32>
    %165 = arith.mulf %160, %164 : vector<4x384xf32>
    %166 = arith.addf %165, %1 : vector<4x384xf32>
    %c0_90 = arith.constant 0 : index
    %c0_91 = arith.constant 0 : index
    %c0_92 = arith.constant 0 : index
    %167 = vector.load %arg7[%c0_90, %c0_91, %c0_92] : memref<1x4x384xf32, #tpu.memory_space<vmem>>, vector<1x4x384xf32>
    %168 = vector.shape_cast %167 : vector<1x4x384xf32> to vector<4x384xf32>
    %169 = vector.shape_cast %166 : vector<4x384xf32> to vector<1x4x384xf32>
    tpu.vector_store %arg7[%c0_90, %c0_91, %c0_92], %169 {strides = array<i32>} : memref<1x4x384xf32, #tpu.memory_space<vmem>>, vector<1x4x384xf32>,
    return
  }
  func.func @transform_0(%arg0: i32) -> (i32, i32, i32) {
    %c0_i32 = arith.constant 0 : i32
    %c0_i32_0 = arith.constant 0 : i32
    %c0_i32_1 = arith.constant 0 : i32
    return %arg0, %c0_i32, %c0_i32_0 : i32, i32, i32
  }
  func.func @transform_1(%arg0: i32) -> (i32, i32) {
    %c0_i32 = arith.constant 0 : i32
    %c0_i32_0 = arith.constant 0 : i32
    %c0_i32_1 = arith.constant 0 : i32
    return %c0_i32, %c0_i32_0 : i32, i32
  }
  func.func @transform_2(%arg0: i32) -> (i32, i32, i32) {
    %c0_i32 = arith.constant 0 : i32
    %c0_i32_0 = arith.constant 0 : i32
    %c0_i32_1 = arith.constant 0 : i32
    %c0_i32_2 = arith.constant 0 : i32
    return %c0_i32, %c0_i32_0, %c0_i32_1 : i32, i32, i32
  }
  func.func @transform_3(%arg0: i32) -> (i32, i32) {
    %c0_i32 = arith.constant 0 : i32
    %c0_i32_0 = arith.constant 0 : i32
    %c0_i32_1 = arith.constant 0 : i32
    return %c0_i32, %c0_i32_0 : i32, i32
  }
  func.func @transform_4(%arg0: i32) -> (i32, i32, i32) {
    %c0_i32 = arith.constant 0 : i32
    %c0_i32_0 = arith.constant 0 : i32
    %c0_i32_1 = arith.constant 0 : i32
    %c0_i32_2 = arith.constant 0 : i32
    return %c0_i32, %c0_i32_0, %c0_i32_1 : i32, i32, i32
  }
  func.func @transform_5(%arg0: i32) -> (i32, i32) {
    %c0_i32 = arith.constant 0 : i32
    %c0_i32_0 = arith.constant 0 : i32
    %c0_i32_1 = arith.constant 0 : i32
    return %c0_i32, %c0_i32_0 : i32, i32
  }
  func.func @transform_6(%arg0: i32) -> (i32, i32, i32) {
    %c0_i32 = arith.constant 0 : i32
    %c0_i32_0 = arith.constant 0 : i32
    %c0_i32_1 = arith.constant 0 : i32
    return %arg0, %c0_i32, %c0_i32_0 : i32, i32, i32
  }
}

</mosaic_0001>

<bundles_post_ra>
// kernel: tpu_custom_call.1
= control target key start
LH: loop header
LB: loop body
LE: loop exit
PB: predicated region body
PF: predicated region fallthrough
CT: control target
= control target key end

     0   :  { %11 = vsyncpa [#allocation3], 0  ;;  %s3000_s0 = inlined_call_operand.vmem [shape: f32[2,4,384], index: 0, kind: input, shape index: {}]   ;;  %s3001_s1 = inlined_call_operand.vmem [shape: f32[5,384], index: 1, kind: input, shape index: {}]   ;;  %s3002_s2 = inlined_call_operand.vmem [shape: f32[9,4,4], index: 2, kind: input, shape index: {}]   ;;  %s3003_s3 = inlined_call_operand.vmem [shape: f32[4,1], index: 3, kind: input, shape index: {}]   ;;  %s3004_s4 = inlined_call_operand.vmem [shape: f32[9,4,4], index: 4, kind: input, shape index: {}]   ;;  %s3005_s5 = inlined_call_operand.vmem [shape: f32[4,1], index: 5, kind: input, shape index: {}]   ;;  %s3006_s6 = inlined_call_operand.hbm [shape: f32[2,4,384], index: 6, kind: output, shape index: {}]  }
   0x1   :  { %13 = vsyncpa [#allocation3 + $0x1], 0  ;;  %s2456_s21 = smov 0   ;;  %s2458_s22 = smov 0  }
   0x2   :  { %s2460_s23 = smov 0   ;;  %s2462_s24 = smov 0  }
   0x3 LB: > { %s2477_s25 = sadd.s32 4294967295, %s2406_s24   ;;  %s2151_s26 = sadd.s32 4294967294, %s2406_s24   ;;  %s2406_s24 = sphi %s2462_s24, %s3012_s24   ;;  %s2402_s23 = sphi %s2460_s23, %s3011_s23   ;;  %s2398_s22 = sphi %s2458_s22, %s3010_s22   ;;  %s2394_s21 = sphi %s2456_s21, %s3009_s21  }
   0x4   : > { %s2481_s27 = sadd.s32 1, %s2406_s24   ;;  %s157_s28 = sadd.s32 1, %s2402_s23 }
   0x5   : > { %s154_s29 = ssub.s32 %s2406_s24, %s2481_s27  ;;  %p167_p0 = scmp.ne.s32.totalorder %s2402_s23, %s2398_s22 }
   0x6   : > { %p155_p1 = scmp.eq.s32.totalorder %s154_s29, 0  ;;  %p168_p2 = scmp.eq.s32.totalorder %s2477_s25, 1 }
   0x7   : > { %p173_p3 = scmp.ne.s32.totalorder %s2398_s22, %s2394_s21  ;;  %p174_p4 = scmp.eq.s32.totalorder %s2151_s26, 1 }
   0x8   : > { %s2492_s30 = scalar_select %p155_p1, %s2402_s23, %s157_s28  }
   0x9   : > { %p2494_p5 = por %p168_p2, %p167_p0  ;;  %p2498_p6 = por %p174_p4, %p173_p3 }
   0xa   : > { %p2154_p7 = scmp.ge.s32.totalorder %s2406_s24, 1  ;;  %p215_p8 = scmp.lt.s32.totalorder %s2406_s24, 3 }
   0xc   : > { %p216_p9 = pnand %p2154_p7, %p215_p8 }
   0xd   : > { %p245_p10 = scmp.lt.s32.totalorder (!%p216_p9), %s2477_s25, 1  ;;  %s2408_s14 = smov (!%p216_p9), 19  }
   0xe   : > { %219 = sbr.rel (%p216_p9) target bundleno = 1629 (0x65d), region = 44  ;;  %s2409_s15 = smov (!%p216_p9), 18  }
   0xf   : > { %s2410_s16 = smov (!%p216_p9), 17   ;;  %s2411_s17 = smov (!%p216_p9), 1  }
  0x10   : > { %s2412_s18 = smov (!%p216_p9), 127   ;;  %s2413_s19 = smov (!%p216_p9), 111  }
  0x11   : > { %s2414_s20 = smov (!%p216_p9), 110   ;;  %s2415_s26 = smov (!%p216_p9), 109  }
  0x12   : > { %s2417_s12 = smov (!%p216_p9), 2   ;;  %s2419_s28 = smov (!%p216_p9), 92  }
  0x13   : > { %s246_s9 = scalar_select %p245_p10, %s2477_s25, 1  ;;  %v272_v30 = vlaneseq  ;;  %vm304_vm1 = vcmask 1043456   ;;  %v278_v34 = vld [vmem:[%s3002_s2] sm:$0xf]  ;;  %vm300_vm3 = vcmask 31744   ;;  %v2416_v61 = vmov 0  }
  0x14   : > { %v2156_v40 = vld [vmem:[%s3002_s2 + $0x4] sm:$0xf]  ;;  %v2169_v41 = vld [vmem:[%s3002_s2 + $0x8] sm:$0xf]  ;;  %v2176_v55 = vld [vmem:[%s3002_s2 + $0xc] sm:$0xf]  ;;  %2338 = vset.pattern.permute.xlu0 %v2416_v61  ;;  %2339 = vset.pattern.permute.xlu2 %v2416_v61 }
  0x15   : > { %s2284_s10 = smul.u32 12, %s246_s9  ;;  %v2563_v32 = vand.u32 127, %v272_v30  ;;  %v1102_v60 = vld [vmem:[%s3003_s3] sm:$0xf]  ;;  %s2420_s29 = smov 36  }
  0x17   : > { %s249_s13 = scalar_lea.vmem %s3000_s0, %s2284_s10  ;;  %vm274_vm0 = vcmp.lt.s32.totalorder %v2563_v32, 19  ;;  %vm461_vm2 = vcmp.lt.s32.totalorder %v2563_v32, 17  ;;  %vm294_vm4 = vcmp.lt.s32.totalorder %v2563_v32, 18  ;;  %vm557_vm5 = vcmp.lt.s32.totalorder %v2563_v32, 1 }
  0x18   : > { %v2509_v0 = vld [vmem:[%s249_s13] sm:$0xff]  ;;  %v2511_v1 = vld [vmem:[%s249_s13 + $0x8] sm:$0xf]  ;;  %vm733_vm6 = vcmp.lt.s32.totalorder %v2563_v32, 127  ;;  %vm829_vm7 = vcmp.lt.s32.totalorder %v2563_v32, 111  ;;  %vm925_vm8 = vcmp.lt.s32.totalorder %v2563_v32, 110 }
  0x19   : > { %257 = vst [vmem:[#allocation1] ss:$2 sm:$0xff] %v2509_v0  ;;  %vm1021_vm9 = vcmp.lt.s32.totalorder %v2563_v32, 109  ;;  %s2418_s13 = smov 126   ;;  %vm1165_vm13 = vcmp.lt.s32.totalorder %v2563_v32, 126  ;;  %vm1187_vm14 = vcmp.lt.s32.totalorder %v2563_v32, 2 }
  0x1a   : > { %259 = vst [vmem:[#allocation1 + $0x10] ss:$2 sm:$0xff] %v2511_v1  ;;  %vm1209_vm15 = vcmp.lt.s32.totalorder %v2563_v32, 92 }
  0x20   : > { %v260_v2 = vld.sshfl [vmem:[#allocation1] sm:$0xff pattern:$0x75316420]  ;;  %v261_v3 = vld.sshfl [vmem:[#allocation1 + $0x8] sm:$0xff pattern:$0x75316420] }
  0x21   : > { %266 = vrot.lane.b32.xlu1 %v260_v2, %s2408_s14  ;;  %279 = vst [vmem:[#allocation1] ss:$2 sm:$0xff] %v2509_v0  ;;  %v262_v4 = vld.sshfl [vmem:[#allocation1 + $0x10] sm:$0xff pattern:$0x75316420] }
  0x22   : > { %281 = vst [vmem:[#allocation1 + $0x10] ss:$2 sm:$0xff] %v2511_v1  ;;  %270 = vrot.lane.b32.xlu2 %v262_v4, %s2408_s14  ;;  %v2190_v2 = vld [vmem:[%s3002_s2 + $0x14] sm:$0xf] }
  0x28   : > { %v283_v5 = vld.sshfl [vmem:[#allocation1 + $0x8] sm:$0xff pattern:$0x75316420]  ;;  %v282_v6 = vld.sshfl [vmem:[#allocation1] sm:$0xff pattern:$0x75316420] }
  0x29   : > { %290 = vrot.lane.b32.xlu0 %v283_v5, %s2409_s15  ;;  %288 = vrot.lane.b32.xlu1 %v282_v6, %s2409_s15  ;;  %446 = vst [vmem:[#allocation1] ss:$2 sm:$0xff] %v2509_v0  ;;  %v284_v7 = vld.sshfl [vmem:[#allocation1 + $0x10] sm:$0xff pattern:$0x75316420] }
  0x2a   : > { %448 = vst [vmem:[#allocation1 + $0x10] ss:$2 sm:$0xff] %v2511_v1 }
  0x30   : > { %v449_v8 = vld.sshfl [vmem:[#allocation1] sm:$0xff pattern:$0x75316420]  ;;  %v450_v9 = vld.sshfl [vmem:[#allocation1 + $0x8] sm:$0xff pattern:$0x75316420] }
  0x31   : > { %542 = vst [vmem:[#allocation1] ss:$2 sm:$0xff] %v2509_v0  ;;  %292 = vrot.lane.b32.xlu0 %v284_v7, %s2409_s15  ;;  %268 = vrot.lane.b32.xlu1 %v261_v3, %s2408_s14  ;;  %v451_v10 = vld.sshfl [vmem:[#allocation1 + $0x10] sm:$0xff pattern:$0x75316420] }
  0x32   : > { %544 = vst [vmem:[#allocation1 + $0x10] ss:$2 sm:$0xff] %v2511_v1  ;;  %455 = vrot.lane.b32.xlu2 %v449_v8, %s2410_s16 }
  0x38   : > { %v546_v11 = vld.sshfl [vmem:[#allocation1 + $0x8] sm:$0xff pattern:$0x75316420]  ;;  %v545_v12 = vld.sshfl [vmem:[#allocation1] sm:$0xff pattern:$0x75316420] }
  0x39   : > { %v547_v13 = vld.sshfl [vmem:[#allocation1 + $0x10] sm:$0xff pattern:$0x75316420]  ;;  %459 = vrot.lane.b32.xlu0 %v451_v10, %s2410_s16  ;;  %553 = vrot.lane.b32.xlu1 %v546_v11, %s2411_s17  ;;  %640 = vst [vmem:[#allocation1] ss:$2 sm:$0xff] %v2509_v0 }
  0x3a   : > { %642 = vst [vmem:[#allocation1 + $0x10] ss:$2 sm:$0xff] %v2511_v1  ;;  %457 = vrot.lane.b32.xlu2 %v450_v9, %s2410_s16  ;;  %v2197_v10 = vld [vmem:[%s3002_s2 + $0x18] sm:$0xf] }
  0x40   : > { %v2533_v14 = vld.sshfl [vmem:[#allocation1] sm:$0xff pattern:$0x75316420]  ;;  %v2535_v15 = vld.sshfl [vmem:[#allocation1 + $0x8] sm:$0xff pattern:$0x75316420] }
  0x41   : > { %v2537_v16 = vld.sshfl [vmem:[#allocation1 + $0x10] sm:$0xff pattern:$0x75316420]  ;;  %551 = vrot.lane.b32.xlu0 %v545_v12, %s2411_s17  ;;  %718 = vst [vmem:[#allocation1] ss:$2 sm:$0xff] %v2509_v0 }
  0x42   : > { %720 = vst [vmem:[#allocation1 + $0x10] ss:$2 sm:$0xff] %v2511_v1  ;;  %555 = vrot.lane.b32.xlu2 %v547_v13, %s2411_s17 }
  0x48   : > { %v722_v17 = vld.sshfl [vmem:[#allocation1 + $0x8] sm:$0xff pattern:$0x75316420]  ;;  %v721_v18 = vld.sshfl [vmem:[#allocation1] sm:$0xff pattern:$0x75316420] }
  0x49   : > { %729 = vrot.lane.b32.xlu1 %v722_v17, %s2412_s18  ;;  %727 = vrot.lane.b32.xlu0 %v721_v18, %s2412_s18  ;;  %814 = vst [vmem:[#allocation1] ss:$2 sm:$0xff] %v2509_v0  ;;  %v723_v19 = vld.sshfl [vmem:[#allocation1 + $0x10] sm:$0xff pattern:$0x75316420] }
  0x4a   : > { %816 = vst [vmem:[#allocation1 + $0x10] ss:$2 sm:$0xff] %v2511_v1 }
  0x50   : > { %v818_v20 = vld.sshfl [vmem:[#allocation1 + $0x8] sm:$0xff pattern:$0x75316420]  ;;  %v817_v21 = vld.sshfl [vmem:[#allocation1] sm:$0xff pattern:$0x75316420] }
  0x51   : > { %v819_v22 = vld.sshfl [vmem:[#allocation1 + $0x10] sm:$0xff pattern:$0x75316420]  ;;  %731 = vrot.lane.b32.xlu1 %v723_v19, %s2412_s18  ;;  %825 = vrot.lane.b32.xlu0 %v818_v20, %s2413_s19  ;;  %910 = vst [vmem:[#allocation1] ss:$2 sm:$0xff] %v2509_v0 }
  0x52   : > { %912 = vst [vmem:[#allocation1 + $0x10] ss:$2 sm:$0xff] %v2511_v1  ;;  %823 = vrot.lane.b32.xlu2 %v817_v21, %s2413_s19 }
  0x58   : > { %v914_v23 = vld.sshfl [vmem:[#allocation1 + $0x8] sm:$0xff pattern:$0x75316420]  ;;  %v913_v24 = vld.sshfl [vmem:[#allocation1] sm:$0xff pattern:$0x75316420] }
  0x59   : > { %v915_v25 = vld.sshfl [vmem:[#allocation1 + $0x10] sm:$0xff pattern:$0x75316420]  ;;  %921 = vrot.lane.b32.xlu0 %v914_v23, %s2414_s20  ;;  %1006 = vst [vmem:[#allocation1] ss:$2 sm:$0xff] %v2509_v0 }
  0x5a   : > { %1008 = vst [vmem:[#allocation1 + $0x10] ss:$2 sm:$0xff] %v2511_v1  ;;  %923 = vrot.lane.b32.xlu1 %v915_v25, %s2414_s20  ;;  %827 = vrot.lane.b32.xlu2 %v819_v22, %s2413_s19  ;;  %v2211_v23 = vld [vmem:[%s3002_s2 + $0x20] sm:$0xf] }
  0x60   : > { %v1009_v26 = vld.sshfl [vmem:[#allocation1] sm:$0xff pattern:$0x75316420]  ;;  %v1010_v27 = vld.sshfl [vmem:[#allocation1 + $0x8] sm:$0xff pattern:$0x75316420] }
  0x61   : > { %v1011_v28 = vld.sshfl [vmem:[#allocation1 + $0x10] sm:$0xff pattern:$0x75316420]  ;;  %1015 = vrot.lane.b32.xlu0 %v1009_v26, %s2415_s26  ;;  %2056 = vst [vmem:[#allocation1] ss:$2 sm:$0xff] %v2509_v0 }
  0x62   : > { %2058 = vst [vmem:[#allocation1 + $0x10] ss:$2 sm:$0xff] %v2511_v1  ;;  %1019 = vrot.lane.b32.xlu1 %v1011_v28, %s2415_s26  ;;  %919 = vrot.lane.b32.xlu2 %v913_v24, %s2414_s20  ;;  %v2183_v0 = vld [vmem:[%s3002_s2 + $0x10] sm:$0xf] }
  0x69   : > { %1105 = vperm.xlu0 %2338, %v1102_v60  }
  0x6a   : > { %1017 = vrot.lane.b32.xlu2 %v1010_v27, %s2415_s26 }
  0x7c   : > { %v271_v29 = vpop.permute.xlu2 %270 }
  0x8c   : > { %v456_v31 = vpop.permute.xlu2 %455 }
  0x93   : > { %v267_v33 = vpop.permute.xlu1 %266 }
  0x94   : > { %v277_v35 = vsel %vm274_vm0, %v271_v29, %v267_v33  ;;  %v458_v36 = vpop.permute.xlu2 %457 }
  0x95   : > { %2163 = vmatpush.msk.msra.mxu3 %vm304_vm1, %v277_v35  ;;  %v463_v37 = vsel %vm461_vm2, %v456_v31, %v458_v36 }
  0x96   : > { %2164 = vmatmul.msk.f32.vlgmr.msra.gmra.mxu3 %vm300_vm3, %v278_v34 }
  0x97   : > { %2172 = vmatpush.msk.msrb.mxu3 %vm304_vm1, %v463_v37 }
  0x9b   : > { %v291_v38 = vpop.permute.xlu0 %290  ;;  %v289_v39 = vpop.permute.xlu1 %288 }
  0x9c   : > { %v296_v42 = vsel %vm294_vm4, %v289_v39, %v291_v38  ;;  %v556_v49 = vpop.permute.xlu2 %555 }
  0x9d   : > { %2159 = vmatpush.msk.msra.mxu1 %vm304_vm1, %v296_v42 }
  0x9e   : > { %2160 = vmatmul.msk.f32.vlgmr.msra.gmra.mxu1 %vm300_vm3, %v2156_v40  ;;  %2173 = vmatmul.msk.f32.vlgmr.msrb.gmra.mxu3 %vm300_vm3, %v2169_v41 }
  0xa3   : > { %v293_v43 = vpop.permute.xlu0 %292  ;;  %v269_v44 = vpop.permute.xlu1 %268 }
  0xa4   : > { %v297_v45 = vsel %vm294_vm4, %v293_v43, %v289_v39  ;;  %v295_v46 = vsel %vm294_vm4, %v291_v38, %v293_v43  ;;  %v275_v47 = vsel %vm274_vm0, %v269_v44, %v271_v29  ;;  %v276_v48 = vsel %vm274_vm0, %v267_v33, %v269_v44 }
  0xa5   : > { %2157 = vmatpush.msk.msra.mxu0 %vm304_vm1, %v297_v45  ;;  %2161 = vmatpush.msk.msra.mxu2 %vm304_vm1, %v295_v46 }
  0xa6   : > { %2167 = vmatpush.msk.msrb.mxu1 %vm304_vm1, %v275_v47  ;;  %2158 = vmatmul.msk.f32.vlgmr.msra.gmra.mxu0 %vm300_vm3, %v2156_v40 }
  0xa7   : > { %2162 = vmatmul.msk.f32.vlgmr.msra.gmra.mxu2 %vm300_vm3, %v2156_v40  ;;  %2165 = vmatpush.msk.msrb.mxu0 %vm304_vm1, %v276_v48 }
  0xa8   : > { %2168 = vmatmul.msk.f32.vlgmr.msrb.gmra.mxu1 %vm300_vm3, %v278_v34 }
  0xab   : > { %v460_v50 = vpop.permute.xlu0 %459  ;;  %v554_v51 = vpop.permute.xlu1 %553 }
  0xac   : > { %v462_v52 = vsel %vm461_vm2, %v458_v36, %v460_v50  ;;  %v464_v53 = vsel %vm461_vm2, %v460_v50, %v456_v31  ;;  %v558_v54 = vsel %vm557_vm5, %v554_v51, %v556_v49  ;;  %v824_v59 = vpop.permute.xlu2 %823 }
  0xad   : > { %2170 = vmatpush.msk.msrb.mxu2 %vm304_vm1, %v464_v53  ;;  %2174 = vmatpush.msk.msra.mxu0 %vm304_vm1, %v462_v52 }
  0xae   : > { %2166 = vmatmul.msk.f32.vlgmr.msrb.gmra.mxu0 %vm300_vm3, %v278_v34  ;;  %2181 = vmatpush.msk.msra.mxu3 %vm304_vm1, %v558_v54 }
  0xaf   : > { %2171 = vmatmul.msk.f32.vlgmr.msrb.gmra.mxu2 %vm300_vm3, %v2169_v41  ;;  %2182 = vmatmul.msk.f32.vlgmr.msra.gmra.mxu3 %vm300_vm3, %v2176_v55 }
  0xb0   : > { %2184 = vmatpush.msk.msrb.mxu0 %vm304_vm1, %v2533_v14 }
  0xb3   : > { %v552_v56 = vpop.permute.xlu0 %551 }
  0xb4   : > { %v559_v57 = vsel %vm557_vm5, %v552_v56, %v554_v51  ;;  %v560_v58 = vsel %vm557_vm5, %v556_v49, %v552_v56  ;;  %v828_v3 = vpop.permute.xlu2 %827 }
  0xb5   : > { %2177 = vmatpush.msk.msra.mxu1 %vm304_vm1, %v560_v58  ;;  %2179 = vmatpush.msk.msra.mxu2 %vm304_vm1, %v559_v57  ;;  %v832_v12 = vsel %vm829_vm7, %v828_v3, %v824_v59 }
  0xb6   : > { %2175 = vmatmul.msk.f32.vlgmr.msra.gmra.mxu0 %vm300_vm3, %v2169_v41  ;;  %2178 = vmatmul.msk.f32.vlgmr.msra.gmra.mxu1 %vm300_vm3, %v2176_v55 }
  0xb7   : > { %2180 = vmatmul.msk.f32.vlgmr.msra.gmra.mxu2 %vm300_vm3, %v2176_v55  ;;  %2186 = vmatpush.msk.msrb.mxu1 %vm304_vm1, %v2535_v15 }
  0xb8   : > { %2188 = vmatpush.msk.msrb.mxu2 %vm304_vm1, %v2537_v16  ;;  %v2204_v16 = vld [vmem:[%s3002_s2 + $0x1c] sm:$0xf] }
  0xbb   : > { %v730_v62 = vpop.permute.xlu1 %729  ;;  %v728_v63 = vpop.permute.xlu0 %727 }
  0xbc   : > { %v735_v1 = vsel %vm733_vm6, %v728_v63, %v730_v62  ;;  %v920_v11 = vpop.permute.xlu2 %919 }
  0xbd   : > { %2191 = vmatpush.msk.msrb.mxu3 %vm304_vm1, %v735_v1 }
  0xbe   : > { %2185 = vmatmul.msk.f32.vlgmr.msrb.gmra.mxu0 %vm300_vm3, %v2183_v0  ;;  %2187 = vmatmul.msk.f32.vlgmr.msrb.gmra.mxu1 %vm300_vm3, %v2183_v0 }
  0xbf   : > { %2189 = vmatmul.msk.f32.vlgmr.msrb.gmra.mxu2 %vm300_vm3, %v2183_v0  ;;  %2192 = vmatmul.msk.f32.vlgmr.msrb.gmra.mxu3 %vm300_vm3, %v2190_v2 }
  0xc3   : > { %v732_v4 = vpop.permute.xlu1 %731  ;;  %v826_v5 = vpop.permute.xlu0 %825 }
  0xc4   : > { %v734_v6 = vsel %vm733_vm6, %v730_v62, %v732_v4  ;;  %v736_v7 = vsel %vm733_vm6, %v732_v4, %v728_v63  ;;  %v830_v8 = vsel %vm829_vm7, %v826_v5, %v828_v3  ;;  %v831_v9 = vsel %vm829_vm7, %v824_v59, %v826_v5  ;;  %v1018_v19 = vpop.permute.xlu2 %1017  ;;  %v2711_v3 = vld [vmem:[%s3001_s1] sm:$0x1f]  ;;  %v2716_v4 = vld [vmem:[%s3001_s1 + $0x8] sm:$0x1f] }
  0xc5   : > { %2193 = vmatpush.msk.msra.mxu0 %vm304_vm1, %v734_v6  ;;  %2195 = vmatpush.msk.msra.mxu1 %vm304_vm1, %v736_v7 }
  0xc6   : > { %2198 = vmatpush.msk.msra.mxu2 %vm304_vm1, %v831_v9  ;;  %2200 = vmatpush.msk.msra.mxu3 %vm304_vm1, %v830_v8 }
  0xc7   : > { %2194 = vmatmul.msk.f32.vlgmr.msra.gmra.mxu0 %vm300_vm3, %v2190_v2  ;;  %2196 = vmatmul.msk.f32.vlgmr.msra.gmra.mxu1 %vm300_vm3, %v2190_v2 }
  0xc8   : > { %2199 = vmatmul.msk.f32.vlgmr.msra.gmra.mxu2 %vm300_vm3, %v2197_v10  ;;  %2201 = vmatmul.msk.f32.vlgmr.msra.gmra.mxu3 %vm300_vm3, %v2197_v10 }
  0xc9   : > { %2202 = vmatpush.msk.msrb.mxu0 %vm304_vm1, %v832_v12  ;;  %v2719_v12 = vperm.slane %v2711_v3, 0 }
  0xcb   : > { %v922_v13 = vpop.permute.xlu0 %921 }
  0xcc   : > { %v924_v14 = vpop.permute.xlu1 %923  ;;  %v927_v15 = vsel %vm925_vm8, %v920_v11, %v922_v13 }
  0xcd   : > { %v926_v17 = vsel %vm925_vm8, %v922_v13, %v924_v14  ;;  %v928_v18 = vsel %vm925_vm8, %v924_v14, %v920_v11  ;;  %2205 = vmatpush.msk.msrb.mxu1 %vm304_vm1, %v927_v15  ;;  %v2722_v13 = vperm.slane %v2716_v4, 0 }
  0xce   : > { %2207 = vmatpush.msk.msrb.mxu2 %vm304_vm1, %v926_v17  ;;  %2209 = vmatpush.msk.msrb.mxu3 %vm304_vm1, %v928_v18  ;;  %v2727_v18 = vld [vmem:[%s3001_s1 + $0x10] sm:$0x1f] }
  0xcf   : > { %2203 = vmatmul.msk.f32.vlgmr.msrb.gmra.mxu0 %vm300_vm3, %v2197_v10  ;;  %2206 = vmatmul.msk.f32.vlgmr.msrb.gmra.mxu1 %vm300_vm3, %v2204_v16 }
  0xd0   : > { %2208 = vmatmul.msk.f32.vlgmr.msrb.gmra.mxu2 %vm300_vm3, %v2204_v16  ;;  %2210 = vmatmul.msk.f32.vlgmr.msrb.gmra.mxu3 %vm300_vm3, %v2204_v16 }
  0xd3   : > { %v1016_v20 = vpop.permute.xlu0 %1015 }
  0xd4   : > { %v1020_v21 = vpop.permute.xlu1 %1019  ;;  %v1023_v22 = vsel %vm1021_vm9, %v1016_v20, %v1018_v19 }
  0xd5   : > { %v1022_v24 = vsel %vm1021_vm9, %v1018_v19, %v1020_v21  ;;  %v1024_v25 = vsel %vm1021_vm9, %v1020_v21, %v1016_v20  ;;  %2212 = vmatpush.msk.msra.mxu0 %vm304_vm1, %v1023_v22 }
  0xd6   : > { %2214 = vmatpush.msk.msra.mxu1 %vm304_vm1, %v1022_v24  ;;  %2216 = vmatpush.msk.msra.mxu2 %vm304_vm1, %v1024_v25  ;;  %v2732_v24 = vperm.slane %v2727_v18, 0 }
  0xd7   : > { %2213 = vmatmul.msk.f32.vlgmr.msra.gmra.mxu0 %vm300_vm3, %v2211_v23  ;;  %2215 = vmatmul.msk.f32.vlgmr.msra.gmra.mxu1 %vm300_vm3, %v2211_v23 }
  0xd8   : > { %2217 = vmatmul.msk.f32.vlgmr.msra.gmra.mxu2 %vm300_vm3, %v2211_v23 }
  0xdb   : > { %v1106_v5 = vpop.permute.xlu0 %1105 }
 0x119   : > { %v403_v28 = vpop.f32.mrf.mxu3 }
 0x11b   : > { %v351_v26 = vpop.f32.mrf.mxu1 }
 0x121   : > { %v516_v33 = vpop.f32.mrf.mxu3 }
 0x123   : > { %v331_v27 = vpop.f32.mrf.mxu0 }
 0x124   : > { %v404_v42 = vadd.f32 %v403_v28, %v331_v27 }
 0x125   : > { %v443_v30 = vpop.f32.mrf.mxu1 }
 0x12a   : > { %v371_v29 = vpop.f32.mrf.mxu2 }
 0x12b   : > { %v423_v31 = vpop.f32.mrf.mxu0  ;;  %v444_v50 = vadd.f32 %v443_v30, %v371_v29 }
 0x12c   : > { %v424_v44 = vadd.f32 %v423_v31, %v351_v26 }
 0x12e   : > { %v540_v48 = vadd.f32 %v516_v33, %v424_v44 }
 0x132   : > { %v496_v34 = vpop.f32.mrf.mxu2  ;;  %v632_v37 = vpop.f32.mrf.mxu3 }
 0x133   : > { %v536_v35 = vpop.f32.mrf.mxu0  ;;  %v592_v36 = vpop.f32.mrf.mxu1  ;;  %v539_v47 = vadd.f32 %v496_v34, %v404_v42 }
 0x134   : > { %v541_v54 = vadd.f32 %v536_v35, %v444_v50 }
 0x135   : > { %v635_v49 = vadd.f32 %v592_v36, %v539_v47 }
 0x136   : > { %v637_v61 = vadd.f32 %v632_v37, %v541_v54 }
 0x13a   : > { %v612_v38 = vpop.f32.mrf.mxu2 }
 0x13b   : > { %v672_v39 = vpop.f32.mrf.mxu0  ;;  %v692_v40 = vpop.f32.mrf.mxu1  ;;  %v636_v51 = vadd.f32 %v612_v38, %v540_v48 }
 0x13c   : > { %v715_v52 = vadd.f32 %v672_v39, %v635_v49 }
 0x13d   : > { %v716_v59 = vadd.f32 %v692_v40, %v636_v51 }
 0x142   : > { %v712_v41 = vpop.f32.mrf.mxu2  ;;  %v768_v43 = vpop.f32.mrf.mxu3 }
 0x143   : > { %v811_v57 = vadd.f32 %v768_v43, %v715_v52  ;;  %v717_v63 = vadd.f32 %v712_v41, %v637_v61 }
 0x144   : > { %v788_v45 = vpop.f32.mrf.mxu0  ;;  %v808_v46 = vpop.f32.mrf.mxu1 }
 0x145   : > { %v812_v62 = vadd.f32 %v788_v45, %v716_v59  ;;  %v813_v10 = vadd.f32 %v808_v46, %v717_v63 }
 0x14b   : > { %v864_v53 = vpop.f32.mrf.mxu2  ;;  %v884_v58 = vpop.f32.mrf.mxu3 }
 0x14c   : > { %v904_v55 = vpop.f32.mrf.mxu0  ;;  %v960_v56 = vpop.f32.mrf.mxu1  ;;  %v907_v60 = vadd.f32 %v864_v53, %v811_v57  ;;  %v908_v0 = vadd.f32 %v884_v58, %v812_v62 }
 0x14d   : > { %v909_v16 = vadd.f32 %v904_v55, %v813_v10 }
 0x14e   : > { %v1003_v1 = vadd.f32 %v960_v56, %v907_v60 }
 0x153   : > { %v980_v2 = vpop.f32.mrf.mxu2  ;;  %v1000_v14 = vpop.f32.mrf.mxu3 }
 0x154   : > { %v1004_v6 = vadd.f32 %v980_v2, %v908_v0  ;;  %v1056_v7 = vpop.f32.mrf.mxu0  ;;  %v1076_v8 = vpop.f32.mrf.mxu1  ;;  %v1005_v19 = vadd.f32 %v1000_v14, %v909_v16 }
 0x155   : > { %v1099_v9 = vadd.f32 %v1056_v7, %v1003_v1 }
 0x156   : > { %v1100_v11 = vadd.f32 %v1076_v8, %v1004_v6  ;;  %v1172_v6 = vperm.slane %v2711_v3, 1 }
 0x157   : > { %v1108_v15 = vadd.f32 %v1106_v5, %v1099_v9 }
 0x158   : > { %v1109_v17 = vadd.f32 %v1106_v5, %v1100_v11  ;;  %v1173_v11 = vperm.slane %v2716_v4, 1 }
 0x159   : > { %v1114_v20 = vmul.f32 %v2719_v12, %v1108_v15 }
 0x15a   : > { %v1115_v21 = vmul.f32 %v2722_v13, %v1109_v17 }
 0x15b   : > { %v1096_v22 = vpop.f32.mrf.mxu2  ;;  %v1117_v26 = vsel %vm304_vm1, %v1114_v20, 0.0  ;;  %v1194_v20 = vperm.slane %v2711_v3, 2 }
 0x15c   : > { %v1101_v23 = vadd.f32 %v1096_v22, %v1005_v19  ;;  %v1118_v27 = vsel %vm304_vm1, %v1115_v21, 0.0 }
 0x15d   : > { %v1119_v29 = vadd.f32 %v1118_v27, %v1117_v26 }
 0x15e   : > { %v1110_v25 = vadd.f32 %v1106_v5, %v1101_v23 }
 0x160   : > { %v1116_v28 = vmul.f32 %v2732_v24, %v1110_v25 }
 0x162   : > { %v1120_v30 = vsel %vm304_vm1, %v1116_v28, 0.0 }
 0x163   : > { %v1121_v31 = vadd.f32 %v1120_v30, %v1119_v29 }
 0x165   : > { %1122 = vadd.xlane.f32.xlu1 %v1121_v31 }
 0x1d8   : > { %v1123_v33 = vpop.xlane.xlu1 %1122 }
 0x1d9   : > { %v1124_v34 = vmul.f32 0.00390625, %v1123_v33  ;;  %v1195_v33 = vperm.slane %v2716_v4, 2 }
 0x1db   : > { %v1125_v35 = vsub.f32 %v1108_v15, %v1124_v34  ;;  %v1126_v36 = vsub.f32 %v1109_v17, %v1124_v34  ;;  %v1127_v37 = vsub.f32 %v1110_v25, %v1124_v34  ;;  %v1174_v25 = vperm.slane %v2727_v18, 1 }
 0x1dd   : > { %v1128_v38 = vmul.f32 %v1125_v35, %v2719_v12  ;;  %v1129_v39 = vmul.f32 %v1126_v36, %v2722_v13  ;;  %v1130_v40 = vmul.f32 %v1127_v37, %v2732_v24 }
 0x1df   : > { %v1131_v41 = vmul.f32 %v1128_v38, %v1128_v38  ;;  %v1132_v42 = vmul.f32 %v1129_v39, %v1129_v39  ;;  %v1133_v43 = vmul.f32 %v1130_v40, %v1130_v40 }
 0x1e1   : > { %v1134_v44 = vsel %vm304_vm1, %v1131_v41, 0.0  ;;  %v1135_v45 = vsel %vm304_vm1, %v1132_v42, 0.0  ;;  %v1137_v47 = vsel %vm304_vm1, %v1133_v43, 0.0  ;;  %v1196_v41 = vperm.slane %v2727_v18, 2 }
 0x1e2   : > { %v1136_v46 = vadd.f32 %v1135_v45, %v1134_v44  ;;  %v1216_v45 = vperm.slane %v2711_v3, 3 }
 0x1e4   : > { %v1138_v48 = vadd.f32 %v1137_v47, %v1136_v46 }
 0x1e6   : > { %1139 = vadd.xlane.f32.xlu2 %v1138_v48 }
 0x259   : > { %v1140_v49 = vpop.xlane.xlu2 %1139 }
 0x25a   : > { %v1141_v50 = vmul.f32 0.00390625, %v1140_v49 }
 0x25c   : > { %v1142_v51 = vadd.f32 1e-05, %v1141_v50 }
 0x25e   : > { %2340 = vrsqrt.f32 %v1142_v51  ;;  %vm1149_vm11 = vweird.f32 %v1142_v51 }
 0x264   : > { %v2341_v52 = vpop.eup %2340 }
 0x265   : > { %v1144_v53 = vmul.f32 %v2341_v52, %v1142_v51  ;;  %vm1150_vm10 = vweird.f32 %v2341_v52  ;;  %v1217_v51 = vperm.slane %v2716_v4, 3 }
 0x266   : > { %vm1151_vm12 = vmor %vm1149_vm11, %vm1150_vm10  ;;  %vm1231_vm10 = vcmp.lt.s32.totalorder %v2563_v32, 36 }
 0x267   : > { %v1145_v54 = vmul.f32 %v2341_v52, %v1144_v53 }
 0x269   : > { %v1146_v55 = vmul.f32 0.5, %v1145_v54 }
 0x26b   : > { %v1147_v56 = vsub.f32 1.5, %v1146_v55 }
 0x26d   : > { %v1148_v57 = vmul.f32 %v2341_v52, %v1147_v56 }
 0x26f   : > { %v1152_v58 = vsel %vm1151_vm12, %v2341_v52, %v1148_v57  ;;  %v1218_v52 = vperm.slane %v2727_v18, 3 }
 0x270   : > { %v1155_v59 = vmul.f32 %v1152_v58, %v1127_v37  ;;  %v1154_v60 = vmul.f32 %v1152_v58, %v1126_v36  ;;  %v1153_v61 = vmul.f32 %v1152_v58, %v1125_v35 }
 0x272   : > { %v1158_v62 = vmax.f32 %v1155_v59, 0.0  ;;  %v1157_v63 = vmax.f32 %v1154_v60, 0.0  ;;  %v1156_v0 = vmax.f32 %v1153_v61, 0.0 }
 0x274   : > { %1185 = vrot.lane.b32.xlu1 %v1158_v62, %s2417_s12  ;;  %1183 = vrot.lane.b32.xlu2 %v1157_v63, %s2417_s12 }
 0x275   : > { %1159 = vrot.lane.b32.xlu0 %v1156_v0, %s2418_s13 }
 0x27d   : > { %1161 = vrot.lane.b32.xlu0 %v1157_v63, %s2418_s13 }
 0x285   : > { %1163 = vrot.lane.b32.xlu0 %v1158_v62, %s2418_s13 }
 0x28d   : > { %1181 = vrot.lane.b32.xlu0 %v1156_v0, %s2417_s12 }
 0x2ce   : > { %v1184_v23 = vpop.permute.xlu2 %1183 }
 0x2e6   : > { %v1186_v16 = vpop.permute.xlu1 %1185 }
 0x2e7   : > { %v1160_v1 = vpop.permute.xlu0 %1159  ;;  %v1188_v38 = vsel %vm1187_vm14, %v1184_v23, %v1186_v16 }
 0x2ef   : > { %v1162_v2 = vpop.permute.xlu0 %1161 }
 0x2f0   : > { %v1167_v5 = vsel %vm1165_vm13, %v1160_v1, %v1162_v2 }
 0x2f1   : > { %v1169_v7 = vsub.f32 %v1167_v5, %v1156_v0 }
 0x2f3   : > { %v1175_v10 = vmul.f32 %v1172_v6, %v1169_v7 }
 0x2f5   : > { %v1178_v19 = vadd.f32 %v1175_v10, %v1156_v0 }
 0x2f7   : > { %v1164_v8 = vpop.permute.xlu0 %1163 }
 0x2f8   : > { %v1166_v9 = vsel %vm1165_vm13, %v1162_v2, %v1164_v8  ;;  %v1168_v15 = vsel %vm1165_vm13, %v1164_v8, %v1160_v1  ;;  %v1239_v1 = vperm.slane %v2716_v4, 4  ;;  %v1240_v2 = vperm.slane %v2727_v18, 4 }
 0x2f9   : > { %v1170_v14 = vsub.f32 %v1166_v9, %v1157_v63  ;;  %v1171_v26 = vsub.f32 %v1168_v15, %v1158_v62 }
 0x2fb   : > { %v1176_v17 = vmul.f32 %v1173_v11, %v1170_v14  ;;  %v1177_v31 = vmul.f32 %v1174_v25, %v1171_v26 }
 0x2fd   : > { %v1179_v29 = vadd.f32 %v1176_v17, %v1157_v63  ;;  %v1180_v37 = vadd.f32 %v1177_v31, %v1158_v62  ;;  %v1238_v63 = vperm.slane %v2711_v3, 4  ;;  %v1256_v31 = vld [vmem:[%s3004_s4] sm:$0xf] }
 0x2ff   : > { %v1182_v21 = vpop.permute.xlu0 %1181  ;;  %v1193_v40 = vsub.f32 %v1188_v38, %v1180_v37 }
 0x300   : > { %v1190_v22 = vsel %vm1187_vm14, %v1186_v16, %v1182_v21  ;;  %v1189_v28 = vsel %vm1187_vm14, %v1182_v21, %v1184_v23  ;;  %v2218_v23 = vld [vmem:[%s3004_s4 + $0x4] sm:$0xf] }
 0x301   : > { %v1191_v27 = vsub.f32 %v1190_v22, %v1178_v19  ;;  %v1192_v34 = vsub.f32 %v1189_v28, %v1179_v29  ;;  %v1199_v42 = vmul.f32 %v1196_v41, %v1193_v40 }
 0x303   : > { %v1197_v30 = vmul.f32 %v1194_v20, %v1191_v27  ;;  %v1198_v36 = vmul.f32 %v1195_v33, %v1192_v34  ;;  %v1202_v43 = vadd.f32 %v1199_v42, %v1180_v37 }
 0x305   : > { %v1200_v35 = vadd.f32 %v1197_v30, %v1178_v19  ;;  %v1201_v39 = vadd.f32 %v1198_v36, %v1179_v29 }
 0x307   : > { %1203 = vrot.lane.b32.xlu0 %v1200_v35, %s2419_s28 }
 0x30f   : > { %1205 = vrot.lane.b32.xlu0 %v1201_v39, %s2419_s28 }
 0x317   : > { %1207 = vrot.lane.b32.xlu0 %v1202_v43, %s2419_s28 }
 0x379   : > { %v1204_v44 = vpop.permute.xlu0 %1203 }
 0x381   : > { %v1206_v46 = vpop.permute.xlu0 %1205 }
 0x382   : > { %v1211_v47 = vsel %vm1209_vm15, %v1204_v44, %v1206_v46 }
 0x383   : > { %v1213_v48 = vsub.f32 %v1211_v47, %v1200_v35 }
 0x385   : > { %v1219_v49 = vmul.f32 %v1216_v45, %v1213_v48  ;;  %v2238_v45 = vld [vmem:[%s3004_s4 + $0xc] sm:$0xf] }
 0x387   : > { %v1222_v50 = vadd.f32 %v1219_v49, %v1200_v35  ;;  %v2245_v49 = vld [vmem:[%s3004_s4 + $0x10] sm:$0xf] }
 0x389   : > { %1225 = vrot.lane.b32.xlu2 %v1222_v50, %s2420_s29  ;;  %v1208_v53 = vpop.permute.xlu0 %1207 }
 0x38a   : > { %v1210_v54 = vsel %vm1209_vm15, %v1206_v46, %v1208_v53  ;;  %v1212_v55 = vsel %vm1209_vm15, %v1208_v53, %v1204_v44 }
 0x38b   : > { %v1214_v56 = vsub.f32 %v1210_v54, %v1201_v39  ;;  %v1215_v57 = vsub.f32 %v1212_v55, %v1202_v43 }
 0x38d   : > { %v1220_v58 = vmul.f32 %v1217_v51, %v1214_v56  ;;  %v1221_v59 = vmul.f32 %v1218_v52, %v1215_v57  ;;  %v2252_v56 = vld [vmem:[%s3004_s4 + $0x14] sm:$0xf] }
 0x38f   : > { %v1224_v60 = vadd.f32 %v1221_v59, %v1202_v43  ;;  %v1223_v61 = vadd.f32 %v1220_v58, %v1201_v39  ;;  %v2231_v39 = vld [vmem:[%s3004_s4 + $0x8] sm:$0xf] }
 0x391   : > { %1229 = vrot.lane.b32.xlu0 %v1224_v60, %s2420_s29  ;;  %1227 = vrot.lane.b32.xlu1 %v1223_v61, %s2420_s29 }
 0x3e3   : > { %v1226_v62 = vpop.permute.xlu2 %1225 }
 0x403   : > { %v1230_v0 = vpop.permute.xlu0 %1229  ;;  %v1228_v5 = vpop.permute.xlu1 %1227 }
 0x404   : > { %v1234_v6 = vsel %vm1231_vm10, %v1230_v0, %v1226_v62  ;;  %v1232_v7 = vsel %vm1231_vm10, %v1228_v5, %v1230_v0  ;;  %v1233_v8 = vsel %vm1231_vm10, %v1226_v62, %v1228_v5 }
 0x405   : > { %v1235_v9 = vsub.f32 %v1234_v6, %v1222_v50  ;;  %v1236_v10 = vsub.f32 %v1233_v8, %v1223_v61  ;;  %v1237_v11 = vsub.f32 %v1232_v7, %v1224_v60  ;;  %v2266_v6 = vld [vmem:[%s3004_s4 + $0x1c] sm:$0xf] }
 0x407   : > { %v1241_v14 = vmul.f32 %v1238_v63, %v1235_v9  ;;  %v1242_v15 = vmul.f32 %v1239_v1, %v1236_v10  ;;  %v1243_v16 = vmul.f32 %v1240_v2, %v1237_v11 }
 0x409   : > { %v2766_v17 = vadd.f32 %v1241_v14, %v1222_v50  ;;  %v2768_v19 = vadd.f32 %v1242_v15, %v1223_v61  ;;  %v2770_v3 = vadd.f32 %v1243_v16, %v1224_v60  ;;  %v2005_v50 = vld [vmem:[%s3005_s5] sm:$0xf]  ;;  %v2259_v61 = vld [vmem:[%s3004_s4 + $0x18] sm:$0xf] }
 0x40a   : > { %v2273_v15 = vld [vmem:[%s3004_s4 + $0x20] sm:$0xf] }
 0x40b   : > { %1257 = vrot.lane.b32.xlu2 %v2766_v17, %s2409_s15  ;;  %1259 = vrot.lane.b32.xlu0 %v2768_v19, %s2409_s15 }
 0x40c   : > { %1261 = vrot.lane.b32.xlu1 %v2770_v3, %s2409_s15 }
 0x413   : > { %1247 = vrot.lane.b32.xlu2 %v2766_v17, %s2408_s14  ;;  %1251 = vrot.lane.b32.xlu0 %v2770_v3, %s2408_s14 }
 0x414   : > { %1249 = vrot.lane.b32.xlu1 %v2768_v19, %s2408_s14 }
 0x41b   : > { %1412 = vrot.lane.b32.xlu2 %v2766_v17, %s2410_s16  ;;  %1416 = vrot.lane.b32.xlu0 %v2770_v3, %s2410_s16 }
 0x41c   : > { %1414 = vrot.lane.b32.xlu1 %v2768_v19, %s2410_s16 }
 0x423   : > { %1498 = vrot.lane.b32.xlu2 %v2766_v17, %s2411_s17  ;;  %1500 = vrot.lane.b32.xlu0 %v2768_v19, %s2411_s17 }
 0x424   : > { %1502 = vrot.lane.b32.xlu1 %v2770_v3, %s2411_s17  ;;  %s2364_s17 = scalar_lea.hbm %s3006_s6, 24 }
 0x42b   : > { %1661 = vrot.lane.b32.xlu2 %v2766_v17, %s2412_s18  ;;  %1665 = vrot.lane.b32.xlu0 %v2770_v3, %s2412_s18 }
 0x42c   : > { %1663 = vrot.lane.b32.xlu1 %v2768_v19, %s2412_s18 }
 0x433   : > { %1747 = vrot.lane.b32.xlu2 %v2766_v17, %s2413_s19  ;;  %1751 = vrot.lane.b32.xlu0 %v2770_v3, %s2413_s19 }
 0x434   : > { %1749 = vrot.lane.b32.xlu1 %v2768_v19, %s2413_s19  ;;  %s242_s19 = sand.u32 1, %s2398_s22  }
 0x435   : > { %s2076_s28 = scalar_lea.sflag [#allocation3], %s242_s19 }
 0x43b   : > { %1833 = vrot.lane.b32.xlu2 %v2766_v17, %s2414_s20  ;;  %1837 = vrot.lane.b32.xlu0 %v2770_v3, %s2414_s20 }
 0x43c   : > { %1835 = vrot.lane.b32.xlu1 %v2768_v19, %s2414_s20  ;;  %s2285_s20 = smul.u32 12, %s2477_s25 }
 0x43e   : > { %s2087_s11 = scalar_lea.hbm %s3006_s6, %s2285_s20 }
 0x43f   : > { %s2091_s13 = sshll.u32 %s2087_s11, 4  ;;  %s2092_s13 = int_to_ptr.hbm [resolvable:$true] %s2091_s13 }
 0x440   : > { %s2358_s29 = sshra.s32 %s2092_s13, 4  ;;  %s2359_s29 = int_to_ptr.hbm [resolvable:$true] %s2358_s29 }
 0x441   : > { %s2360_s14 = scalar_lea.hbm %s2359_s29, 12  ;;  %p2365_p0 = scmp.lt.s32.totalorder %s2359_s29, %s3006_s6 }
 0x442   : > { %p2361_p11 = scmp.ne.s32.totalorder %s2359_s29, %s2360_s14  ;;  %p2366_p1 = scmp.lt.s32.totalorder %s2364_s17, %s2360_s14 }
 0x443   : > { %1919 = vrot.lane.b32.xlu2 %v2766_v17, %s2415_s26  ;;  %1923 = vrot.lane.b32.xlu0 %v2770_v3, %s2415_s26 }
 0x444   : > { %1921 = vrot.lane.b32.xlu1 %v2768_v19, %s2415_s26  ;;  %s2283_s26 = smul.u32 12, %s242_s19  ;;  %p2362_p12 = pnand %p2361_p11, %p2494_p5 }
 0x445   : > { %p2367_p2 = por %p2366_p1, %p2365_p0 }
 0x446   : > { %s244_s12 = scalar_lea.vmem [#allocation2], %s2283_s26  ;;  %p2363_p13 = pneg %p2362_p12 }
 0x447   : > { %s2089_s25 = sshll.u32 %s244_s12, 4  ;;  %s2090_s25 = int_to_ptr.vmem [resolvable:$true] %s2089_s25 }
 0x448   : > { %p2368_p3 = pnand %p2367_p2, %p2363_p13 }
 0x44b   : > { %2008 = vperm.xlu2 %2339, %v2005_v50  }
 0x465   : > { %v1258_v4 = vpop.permute.xlu2 %1257 }
 0x46d   : > { %v1248_v18 = vpop.permute.xlu2 %1247 }
 0x475   : > { %v1413_v27 = vpop.permute.xlu2 %1412 }
 0x47d   : > { %v1260_v20 = vpop.permute.xlu0 %1259  ;;  %v1499_v35 = vpop.permute.xlu2 %1498 }
 0x47e   : > { %v1264_v21 = vsel %vm294_vm4, %v1258_v4, %v1260_v20  ;;  %v1262_v22 = vpop.permute.xlu1 %1261 }
 0x47f   : > { %v1263_v25 = vsel %vm294_vm4, %v1260_v20, %v1262_v22  ;;  %v1265_v26 = vsel %vm294_vm4, %v1262_v22, %v1258_v4  ;;  %2221 = vmatpush.msk.msrb.mxu0 %vm304_vm1, %v1264_v21 }
 0x480   : > { %2219 = vmatpush.msk.msra.mxu3 %vm304_vm1, %v1265_v26  ;;  %2223 = vmatpush.msk.msrb.mxu1 %vm304_vm1, %v1263_v25 }
 0x481   : > { %2220 = vmatmul.msk.f32.vlgmr.msra.gmra.mxu3 %vm300_vm3, %v2218_v23  ;;  %2222 = vmatmul.msk.f32.vlgmr.msrb.gmra.mxu0 %vm300_vm3, %v2218_v23 }
 0x482   : > { %2224 = vmatmul.msk.f32.vlgmr.msrb.gmra.mxu1 %vm300_vm3, %v2218_v23 }
 0x485   : > { %v1252_v28 = vpop.permute.xlu0 %1251  ;;  %v1662_v46 = vpop.permute.xlu2 %1661 }
 0x486   : > { %v1255_v29 = vsel %vm274_vm0, %v1252_v28, %v1248_v18  ;;  %v1250_v30 = vpop.permute.xlu1 %1249 }
 0x487   : > { %v1253_v33 = vsel %vm274_vm0, %v1250_v30, %v1252_v28  ;;  %v1254_v34 = vsel %vm274_vm0, %v1248_v18, %v1250_v30  ;;  %2225 = vmatpush.msk.msrb.mxu2 %vm304_vm1, %v1255_v29 }
 0x488   : > { %2227 = vmatpush.msk.msrb.mxu3 %vm304_vm1, %v1254_v34  ;;  %2229 = vmatpush.msk.msra.mxu0 %vm304_vm1, %v1253_v33 }
 0x489   : > { %2226 = vmatmul.msk.f32.vlgmr.msrb.gmra.mxu2 %vm300_vm3, %v1256_v31  ;;  %2228 = vmatmul.msk.f32.vlgmr.msrb.gmra.mxu3 %vm300_vm3, %v1256_v31 }
 0x48a   : > { %2230 = vmatmul.msk.f32.vlgmr.msra.gmra.mxu0 %vm300_vm3, %v1256_v31 }
 0x48d   : > { %v1417_v36 = vpop.permute.xlu0 %1416  ;;  %v1748_v57 = vpop.permute.xlu2 %1747 }
 0x48e   : > { %v1420_v37 = vsel %vm461_vm2, %v1417_v36, %v1413_v27  ;;  %v1415_v38 = vpop.permute.xlu1 %1414 }
 0x48f   : > { %v1418_v40 = vsel %vm461_vm2, %v1415_v38, %v1417_v36  ;;  %v1419_v41 = vsel %vm461_vm2, %v1413_v27, %v1415_v38  ;;  %2232 = vmatpush.msk.msra.mxu1 %vm304_vm1, %v1420_v37 }
 0x490   : > { %2234 = vmatpush.msk.msra.mxu2 %vm304_vm1, %v1419_v41  ;;  %2236 = vmatpush.msk.msra.mxu3 %vm304_vm1, %v1418_v40 }
 0x491   : > { %2233 = vmatmul.msk.f32.vlgmr.msra.gmra.mxu1 %vm300_vm3, %v2231_v39  ;;  %2235 = vmatmul.msk.f32.vlgmr.msra.gmra.mxu2 %vm300_vm3, %v2231_v39 }
 0x492   : > { %2237 = vmatmul.msk.f32.vlgmr.msra.gmra.mxu3 %vm300_vm3, %v2231_v39 }
 0x493   : > { %2246 = vmatpush.msk.msrb.mxu3 %vm304_vm1, %v2766_v17 }
 0x495   : > { %v1501_v42 = vpop.permute.xlu0 %1500  ;;  %v1834_v0 = vpop.permute.xlu2 %1833 }
 0x496   : > { %v1505_v43 = vsel %vm557_vm5, %v1499_v35, %v1501_v42  ;;  %v1503_v44 = vpop.permute.xlu1 %1502 }
 0x497   : > { %v1504_v47 = vsel %vm557_vm5, %v1501_v42, %v1503_v44  ;;  %v1506_v48 = vsel %vm557_vm5, %v1503_v44, %v1499_v35  ;;  %2241 = vmatpush.msk.msrb.mxu1 %vm304_vm1, %v1505_v43 }
 0x498   : > { %2239 = vmatpush.msk.msrb.mxu0 %vm304_vm1, %v1506_v48  ;;  %2243 = vmatpush.msk.msrb.mxu2 %vm304_vm1, %v1504_v47 }
 0x499   : > { %2240 = vmatmul.msk.f32.vlgmr.msrb.gmra.mxu0 %vm300_vm3, %v2238_v45  ;;  %2242 = vmatmul.msk.f32.vlgmr.msrb.gmra.mxu1 %vm300_vm3, %v2238_v45 }
 0x49a   : > { %2244 = vmatmul.msk.f32.vlgmr.msrb.gmra.mxu2 %vm300_vm3, %v2238_v45  ;;  %2247 = vmatmul.msk.f32.vlgmr.msrb.gmra.mxu3 %vm300_vm3, %v2245_v49 }
 0x49b   : > { %2248 = vmatpush.msk.msra.mxu0 %vm304_vm1, %v2768_v19  ;;  %2250 = vmatpush.msk.msra.mxu1 %vm304_vm1, %v2770_v3 }
 0x49d   : > { %v1666_v51 = vpop.permute.xlu0 %1665  ;;  %v1920_v9 = vpop.permute.xlu2 %1919 }
 0x49e   : > { %v1669_v52 = vsel %vm733_vm6, %v1666_v51, %v1662_v46  ;;  %v1664_v53 = vpop.permute.xlu1 %1663 }
 0x49f   : > { %v1667_v54 = vsel %vm733_vm6, %v1664_v53, %v1666_v51  ;;  %v1668_v55 = vsel %vm733_vm6, %v1662_v46, %v1664_v53  ;;  %2257 = vmatpush.msk.msrb.mxu0 %vm304_vm1, %v1669_v52 }
 0x4a0   : > { %2253 = vmatpush.msk.msra.mxu2 %vm304_vm1, %v1668_v55  ;;  %2255 = vmatpush.msk.msra.mxu3 %vm304_vm1, %v1667_v54 }
 0x4a1   : > { %2249 = vmatmul.msk.f32.vlgmr.msra.gmra.mxu0 %vm300_vm3, %v2245_v49  ;;  %2251 = vmatmul.msk.f32.vlgmr.msra.gmra.mxu1 %vm300_vm3, %v2245_v49 }
 0x4a2   : > { %2254 = vmatmul.msk.f32.vlgmr.msra.gmra.mxu2 %vm300_vm3, %v2252_v56  ;;  %2256 = vmatmul.msk.f32.vlgmr.msra.gmra.mxu3 %vm300_vm3, %v2252_v56 }
 0x4a5   : > { %v1752_v58 = vpop.permute.xlu0 %1751 }
 0x4a6   : > { %v1755_v59 = vsel %vm829_vm7, %v1752_v58, %v1748_v57  ;;  %v1750_v60 = vpop.permute.xlu1 %1749 }
 0x4a7   : > { %v1753_v62 = vsel %vm829_vm7, %v1750_v60, %v1752_v58  ;;  %v1754_v63 = vsel %vm829_vm7, %v1748_v57, %v1750_v60  ;;  %2264 = vmatpush.msk.msrb.mxu3 %vm304_vm1, %v1755_v59 }
 0x4a8   : > { %2260 = vmatpush.msk.msrb.mxu1 %vm304_vm1, %v1754_v63  ;;  %2262 = vmatpush.msk.msrb.mxu2 %vm304_vm1, %v1753_v62  ;;  %v2009_v63 = vpop.permute.xlu2 %2008 }
 0x4a9   : > { %2258 = vmatmul.msk.f32.vlgmr.msrb.gmra.mxu0 %vm300_vm3, %v2252_v56  ;;  %2261 = vmatmul.msk.f32.vlgmr.msrb.gmra.mxu1 %vm300_vm3, %v2259_v61 }
 0x4aa   : > { %2263 = vmatmul.msk.f32.vlgmr.msrb.gmra.mxu2 %vm300_vm3, %v2259_v61  ;;  %2265 = vmatmul.msk.f32.vlgmr.msrb.gmra.mxu3 %vm300_vm3, %v2259_v61 }
 0x4ad   : > { %v1838_v1 = vpop.permute.xlu0 %1837 }
 0x4ae   : > { %v1841_v2 = vsel %vm925_vm8, %v1838_v1, %v1834_v0  ;;  %v1836_v5 = vpop.permute.xlu1 %1835 }
 0x4af   : > { %v1839_v7 = vsel %vm925_vm8, %v1836_v5, %v1838_v1  ;;  %v1840_v8 = vsel %vm925_vm8, %v1834_v0, %v1836_v5  ;;  %2271 = vmatpush.msk.msra.mxu2 %vm304_vm1, %v1841_v2 }
 0x4b0   : > { %2267 = vmatpush.msk.msra.mxu0 %vm304_vm1, %v1840_v8  ;;  %2269 = vmatpush.msk.msra.mxu1 %vm304_vm1, %v1839_v7 }
 0x4b1   : > { %2268 = vmatmul.msk.f32.vlgmr.msra.gmra.mxu0 %vm300_vm3, %v2266_v6  ;;  %2270 = vmatmul.msk.f32.vlgmr.msra.gmra.mxu1 %vm300_vm3, %v2266_v6 }
 0x4b2   : > { %2272 = vmatmul.msk.f32.vlgmr.msra.gmra.mxu2 %vm300_vm3, %v2266_v6 }
 0x4b5   : > { %v1924_v10 = vpop.permute.xlu0 %1923 }
 0x4b6   : > { %v1927_v11 = vsel %vm1021_vm9, %v1924_v10, %v1920_v9  ;;  %v1922_v14 = vpop.permute.xlu1 %1921 }
 0x4b7   : > { %v1925_v16 = vsel %vm1021_vm9, %v1922_v14, %v1924_v10  ;;  %v1926_v17 = vsel %vm1021_vm9, %v1920_v9, %v1922_v14  ;;  %2278 = vmatpush.msk.msrb.mxu1 %vm304_vm1, %v1927_v11 }
 0x4b8   : > { %2274 = vmatpush.msk.msra.mxu3 %vm304_vm1, %v1926_v17  ;;  %2276 = vmatpush.msk.msrb.mxu0 %vm304_vm1, %v1925_v16 }
 0x4b9   : > { %2275 = vmatmul.msk.f32.vlgmr.msra.gmra.mxu3 %vm300_vm3, %v2273_v15  ;;  %2277 = vmatmul.msk.f32.vlgmr.msrb.gmra.mxu0 %vm300_vm3, %v2273_v15 }
 0x4ba   : > { %2279 = vmatmul.msk.f32.vlgmr.msrb.gmra.mxu1 %vm300_vm3, %v2273_v15 }
 0x4fe   : > { %v1317_v19 = vpop.f32.mrf.mxu0 }
 0x4ff   : > { %v1337_v4 = vpop.f32.mrf.mxu1 }
 0x504   : > { %v1297_v3 = vpop.f32.mrf.mxu3 }
 0x507   : > { %v1409_v18 = vpop.f32.mrf.mxu0 }
 0x508   : > { %v1410_v38 = vadd.f32 %v1409_v18, %v1337_v4 }
 0x50c   : > { %v1369_v20 = vpop.f32.mrf.mxu2  ;;  %v1389_v21 = vpop.f32.mrf.mxu3 }
 0x50d   : > { %v1390_v31 = vadd.f32 %v1389_v21, %v1317_v19  ;;  %v1370_v40 = vadd.f32 %v1369_v20, %v1297_v3 }
 0x50e   : > { %v1452_v32 = vpop.f32.mrf.mxu1 }
 0x50f   : > { %v1495_v47 = vadd.f32 %v1452_v32, %v1370_v40 }
 0x514   : > { %v1472_v22 = vpop.f32.mrf.mxu2 }
 0x515   : > { %v1492_v23 = vpop.f32.mrf.mxu3  ;;  %v1496_v36 = vadd.f32 %v1472_v22, %v1390_v31 }
 0x516   : > { %v1538_v25 = vpop.f32.mrf.mxu0  ;;  %v1558_v26 = vpop.f32.mrf.mxu1  ;;  %v1497_v39 = vadd.f32 %v1492_v23, %v1410_v38 }
 0x517   : > { %v1582_v41 = vadd.f32 %v1558_v26, %v1496_v36  ;;  %v1581_v50 = vadd.f32 %v1538_v25, %v1495_v47  ;;  %v2059_v47 = vld.sshfl [vmem:[#allocation1] sm:$0xff pattern:$0x75316420] }
 0x51d   : > { %v1578_v27 = vpop.f32.mrf.mxu2  ;;  %v1615_v28 = vpop.f32.mrf.mxu3 }
 0x51e   : > { %v1635_v29 = vpop.f32.mrf.mxu0  ;;  %v1655_v30 = vpop.f32.mrf.mxu1  ;;  %v1583_v42 = vadd.f32 %v1578_v27, %v1497_v39  ;;  %v1658_v54 = vadd.f32 %v1615_v28, %v1581_v50 }
 0x51f   : > { %v1659_v43 = vadd.f32 %v1635_v29, %v1582_v41 }
 0x520   : > { %v1660_v49 = vadd.f32 %v1655_v30, %v1583_v42  ;;  %v2060_v42 = vld.sshfl [vmem:[#allocation1 + $0x8] sm:$0xff pattern:$0x75316420] }
 0x525   : > { %v1701_v33 = vpop.f32.mrf.mxu2  ;;  %v1721_v37 = vpop.f32.mrf.mxu3 }
 0x526   : > { %v1741_v34 = vpop.f32.mrf.mxu0  ;;  %v1787_v35 = vpop.f32.mrf.mxu1  ;;  %v1745_v48 = vadd.f32 %v1721_v37, %v1659_v43  ;;  %v1744_v56 = vadd.f32 %v1701_v33, %v1658_v54  ;;  %v2061_v43 = vld.sshfl [vmem:[#allocation1 + $0x10] sm:$0xff pattern:$0x75316420] }
 0x527   : > { %v1746_v53 = vadd.f32 %v1741_v34, %v1660_v49 }
 0x528   : > { %v1830_v0 = vadd.f32 %v1787_v35, %v1744_v56 }
 0x52d   : > { %v1807_v44 = vpop.f32.mrf.mxu2  ;;  %v1827_v52 = vpop.f32.mrf.mxu3 }
 0x52e   : > { %v1873_v45 = vpop.f32.mrf.mxu0  ;;  %v1893_v46 = vpop.f32.mrf.mxu1  ;;  %v1831_v51 = vadd.f32 %v1807_v44, %v1745_v48  ;;  %v1832_v55 = vadd.f32 %v1827_v52, %v1746_v53 }
 0x52f   : > { %v1916_v2 = vadd.f32 %v1873_v45, %v1830_v0 }
 0x530   : > { %v1917_v57 = vadd.f32 %v1893_v46, %v1831_v51 }
 0x535   : > { %v1913_v58 = vpop.f32.mrf.mxu2 }
 0x536   : > { %v1918_v59 = vadd.f32 %v1913_v58, %v1832_v55  ;;  %v1979_v60 = vpop.f32.mrf.mxu0 }
 0x537   : > { %v2003_v61 = vadd.f32 %v1979_v60, %v1917_v57  ;;  %v1999_v62 = vpop.f32.mrf.mxu1 }
 0x538   : > { %v2004_v1 = vadd.f32 %v1999_v62, %v1918_v59 }
 0x539   : > { %v2012_v5 = vadd.f32 %v2009_v63, %v2003_v61 }
 0x53a   : > { %v2013_v7 = vadd.f32 %v2009_v63, %v2004_v1 }
 0x53b   : > { %v2015_v9 = vmul.f32 %v2012_v5, %v2722_v13 }
 0x53c   : > { %v1959_v6 = vpop.f32.mrf.mxu3  ;;  %v2016_v11 = vmul.f32 %v2013_v7, %v2732_v24 }
 0x53d   : > { %v2002_v8 = vadd.f32 %v1959_v6, %v1916_v2  ;;  %v2018_v16 = vsel %vm304_vm1, %v2015_v9, 0.0 }
 0x53e   : > { %v2020_v19 = vsel %vm304_vm1, %v2016_v11, 0.0 }
 0x53f   : > { %v2011_v10 = vadd.f32 %v2009_v63, %v2002_v8 }
 0x541   : > { %v2014_v14 = vmul.f32 %v2011_v10, %v2719_v12 }
 0x543   : > { %v2017_v15 = vsel %vm304_vm1, %v2014_v14, 0.0 }
 0x544   : > { %v2019_v17 = vadd.f32 %v2018_v16, %v2017_v15 }
 0x546   : > { %v2021_v3 = vadd.f32 %v2020_v19, %v2019_v17 }
 0x548   : > { %2022 = vadd.xlane.f32.xlu1 %v2021_v3 }
 0x5bb   : > { %v2023_v4 = vpop.xlane.xlu1 %2022 }
 0x5bc   : > { %v2024_v18 = vmul.f32 0.00390625, %v2023_v4 }
 0x5be   : > { %v2025_v20 = vsub.f32 %v2011_v10, %v2024_v18  ;;  %v2026_v21 = vsub.f32 %v2012_v5, %v2024_v18  ;;  %v2027_v32 = vsub.f32 %v2013_v7, %v2024_v18 }
 0x5c0   : > { %v2028_v22 = vmul.f32 %v2025_v20, %v2719_v12  ;;  %v2029_v23 = vmul.f32 %v2026_v21, %v2722_v13  ;;  %v2030_v25 = vmul.f32 %v2027_v32, %v2732_v24 }
 0x5c2   : > { %v2031_v26 = vmul.f32 %v2028_v22, %v2028_v22  ;;  %v2032_v27 = vmul.f32 %v2029_v23, %v2029_v23  ;;  %v2033_v28 = vmul.f32 %v2030_v25, %v2030_v25 }
 0x5c4   : > { %v2034_v29 = vsel %vm304_vm1, %v2031_v26, 0.0  ;;  %v2035_v30 = vsel %vm304_vm1, %v2032_v27, 0.0  ;;  %v2037_v33 = vsel %vm304_vm1, %v2033_v28, 0.0 }
 0x5c5   : > { %v2036_v31 = vadd.f32 %v2035_v30, %v2034_v29 }
 0x5c7   : > { %v2038_v34 = vadd.f32 %v2037_v33, %v2036_v31 }
 0x5c9   : > { %2039 = vadd.xlane.f32.xlu0 %v2038_v34 }
 0x63c   : > { %v2040_v35 = vpop.xlane.xlu0 %2039 }
 0x63d   : > { %v2041_v12 = vmul.f32 0.00390625, %v2040_v35 }
 0x63f   : > { %v2042_v36 = vadd.f32 1e-05, %v2041_v12 }
 0x641   : > { %2342 = vrsqrt.f32 %v2042_v36  ;;  %vm2049_vm2 = vweird.f32 %v2042_v36 }
 0x647   : > { %v2343_v13 = vpop.eup %2342 }
 0x648   : > { %v2044_v24 = vmul.f32 %v2343_v13, %v2042_v36  ;;  %vm2050_vm0 = vweird.f32 %v2343_v13 }
 0x649   : > { %vm2051_vm3 = vmor %vm2049_vm2, %vm2050_vm0 }
 0x64a   : > { %v2045_v37 = vmul.f32 %v2343_v13, %v2044_v24 }
 0x64c   : > { %v2046_v38 = vmul.f32 0.5, %v2045_v37 }
 0x64e   : > { %v2047_v39 = vsub.f32 1.5, %v2046_v38 }
 0x650   : > { %v2048_v40 = vmul.f32 %v2343_v13, %v2047_v39 }
 0x652   : > { %v2052_v41 = vsel %vm2051_vm3, %v2343_v13, %v2048_v40 }
 0x653   : > { %v2053_v44 = vmul.f32 %v2052_v41, %v2025_v20  ;;  %v2054_v45 = vmul.f32 %v2052_v41, %v2026_v21  ;;  %v2055_v46 = vmul.f32 %v2052_v41, %v2027_v32 }
 0x655   : > { %v2066_v48 = vadd.f32 %v2060_v42, %v2054_v45  ;;  %v2067_v49 = vadd.f32 %v2061_v43, %v2055_v46  ;;  %v2065_v50 = vadd.f32 %v2059_v47, %v2053_v44 }
 0x657   : > { %v2070_v51 = vrot.slane %v2066_v48, 4  ;;  %2074 = vst [vmem:[%s244_s12 + $0x8] sm:$0xf] %v2067_v49 }
 0x659   : > { %v2071_v52 = vsel %vm304_vm1, %v2065_v50, %v2070_v51 }
 0x65a   : > { %2073 = vst [vmem:[%s244_s12] sm:$0xff] %v2071_v52 }
 0x65b   : > { %2371 = shalt.err (!%p2368_p3)
}
 0x65c   : > { %2286 = dma.vmem_to_hbm [thread:$0]  (%p2494_p5), %s2090_s25, 192, %s2092_s13, %s2076_s28  }
 0x65d PF: > { %p2292_p4 = scmp.ge.s32.totalorder %s2406_s24, 2  ;;  %s2103_s19 = sand.u32 1, %s2394_s21  }
 0x65e   : > { %s2104_s26 = scalar_lea.sflag [#allocation3], %s2103_s19 }
 0x65f   : > { %p2289_p7 = pnand %p2292_p4, %p2498_p6 }
 0x661   : > { %p2290_p8 = pneg %p2289_p7 }
 0x663   : > { %2389 = dma.done.wait (%p2290_p8), %s2104_s26, 192  }
 0x664   : > { %2391 = vsyncadd (%p2290_p8), %s2104_s26, 4294967104  ;;  %p16_p9 = scmp.ge.s32.totalorder %s2481_s27, 4   ;;  %s3009_s21 = smov %s2398_s22 }
 0x665   : > { %s3010_s22 = smov %s2402_s23  ;;  %s3011_s23 = smov %s2492_s30 }
 0x666   : > { %s3012_s24 = smov %s2481_s27  ;;  %18 = sbr.rel (!%p16_p9) target bundleno = 3 (0x3), region = 105 }
 0x66b   :  { %2110 = vsyncpa [#allocation3], 1 }
 0x66c   :  { %2112 = vsyncpa [#allocation3 + $0x1], 1 }

</bundles_post_ra>
